<compile_context>
chip_gen: v7x
topology: tpu7x:2x2x1
jax: 0.10.0
libtpu: 0.0.40
codegen_flags: <defaults>
</compile_context>

<pallas_src>
import functools

import jax
import jax.numpy as jnp
from jax.experimental import pallas as pl
from jax.experimental.pallas import tpu as pltpu


def _make_mlp_kernel(num_layers: int, use_tanh: bool, over_param: bool):
    """Kernel body. Activations are (features, TILE_N) tiles (points on lanes)."""

    def kernel(x_ref, *refs):
        out_ref = refs[-1]
        params = refs[:-1]  # interleaved weights (bf16) / biases (f32, (out,1))

        x = x_ref[...]  # (in_dims, TILE_N), f32
        bf = jnp.bfloat16

        if not over_param:
            # Embedding folded into the first matmul (no concat / relayout):
            #   h0 = W0[:, 0:2] @ x + W0[:, 2:4] @ sin(x) + W0[:, 4:6] @ cos(x) + b0
            w0a, w0b, w0c, b0 = (
                params[0][...], params[1][...], params[2][...], params[3][...])
            h = (jnp.dot(w0a, x.astype(bf), preferred_element_type=jnp.float32)
                 + jnp.dot(w0b, jnp.sin(x).astype(bf),
                           preferred_element_type=jnp.float32)
                 + jnp.dot(w0c, jnp.cos(x).astype(bf),
                           preferred_element_type=jnp.float32)
                 + b0)
            idx = 4
        else:
            w0, b0 = params[0][...], params[1][...]
            h = jnp.dot(w0, x.astype(bf),
                        preferred_element_type=jnp.float32) + b0
            idx = 2

        if num_layers > 1:
            h = jnp.maximum(h, 0.0)  # ReLU after first layer (not the last)

        for i in range(1, num_layers):
            w = params[idx][...]
            b = params[idx + 1][...]
            idx += 2
            h = jnp.dot(w, h.astype(bf),
                        preferred_element_type=jnp.float32) + b
            if i < num_layers - 1:
                h = jnp.maximum(h, 0.0)

        if use_tanh:
            h = jnp.tanh(h)

        out_ref[...] = h.astype(out_ref.dtype)

    return kernel


@functools.partial(jax.jit, static_argnames=("use_tanh", "over_param", "block_n"))
def mlp_forward(x, weights, biases, *, use_tanh=True, over_param=False,
                block_n=2048):
    """Run the MLP forward pass as a row-tiled Pallas kernel.

    x:       (N, in_dims) float32 (in_dims = 2 when over_param=False).
    weights: list of (out_features, in_features) float32 arrays (PyTorch layout).
    biases:  list of (out_features,) float32 arrays.
    Returns (y, None) with y of shape (N, out_size), matching the PyTorch module.
    """
    num_layers = len(weights)
    n, in_dims = x.shape
    out_size = weights[-1].shape[0]

    if not over_param:
        assert in_dims == 2, "embedder expects 2-D input coordinates"
        assert weights[0].shape[1] == 6, \
            "first layer in_features must be 6 (= 2 + 2*2 embedding)"

    # Lane-dense tile along the point axis (multiple of 128).
    block_n = max(128, (block_n // 128) * 128)
    tile_n = min(block_n, pl.cdiv(n, 128) * 128)
    n_pad = pl.cdiv(n, tile_n) * tile_n

    # Transpose once so the point axis sits on lanes; zero-pad the tail.
    # (Wrapper-side layout plumbing, fused into the same jit program.)
    x_t = x.T.astype(jnp.float32)  # (in_dims, N)
    if n_pad != n:
        x_t = jnp.pad(x_t, ((0, 0), (0, n_pad - n)))

    # Weights in bf16 (MXU-native operands, f32 accumulation in-kernel);
    # biases stay f32 and are added after accumulation.
    params = []
    w0 = weights[0].astype(jnp.bfloat16)
    b0 = biases[0].reshape(-1, 1).astype(jnp.float32)
    if not over_param:
        params += [w0[:, 0:2], w0[:, 2:4], w0[:, 4:6], b0]
    else:
        params += [w0, b0]
    for w, b in zip(weights[1:], biases[1:]):
        params.append(w.astype(jnp.bfloat16))
        params.append(b.reshape(-1, 1).astype(jnp.float32))

    kernel = _make_mlp_kernel(num_layers, use_tanh, over_param)

    grid = (n_pad // tile_n,)
    in_specs = [pl.BlockSpec((in_dims, tile_n), lambda i: (0, i))]
    # Weights/biases: full blocks, constant index_map -> fetched once,
    # VMEM-resident across all grid steps (~6 KB total).
    for p in params:
        in_specs.append(pl.BlockSpec(p.shape, lambda i: (0, 0)))
    out_spec = pl.BlockSpec((out_size, tile_n), lambda i: (0, i))

    y_t = pl.pallas_call(
        kernel,
        out_shape=jax.ShapeDtypeStruct((out_size, n_pad), jnp.float32),
        grid=grid,
        in_specs=in_specs,
        out_specs=out_spec,
        compiler_params=pltpu.CompilerParams(
            # Row tiles are independent: shard across TensorCores on v7x.
            dimension_semantics=("parallel",),
        ),
    )(x_t, *params)

    y = y_t[:, :n].T
    return y, None


def init_mlp_params(key, in_size, out_size, hidden_neurons, use_bias=True):
    """PyTorch nn.Linear-style uniform init; weights in (out, in) layout."""
    sizes = [in_size] + list(hidden_neurons) + [out_size]
    weights, biases = [], []
    for i in range(len(sizes) - 1):
        fan_in, fan_out = sizes[i], sizes[i + 1]
        key, wk, bk = jax.random.split(key, 3)
        bound = 1.0 / (fan_in ** 0.5)
        w = jax.random.uniform(wk, (fan_out, fan_in), jnp.float32,
                               minval=-bound, maxval=bound)
        if use_bias:
            b = jax.random.uniform(bk, (fan_out,), jnp.float32,
                                   minval=-bound, maxval=bound)
        else:
            b = jnp.zeros((fan_out,), jnp.float32)
        weights.append(w)
        biases.append(b)
    return weights, biases


def mlp_reference(x, weights, biases, *, use_tanh=True, over_param=False):
    """Plain-JAX (f32) reference for validation."""
    h = x
    if not over_param:
        h = jnp.concatenate([x, jnp.sin(x), jnp.cos(x)], axis=-1)
    for i, (w, b) in enumerate(zip(weights, biases)):
        h = h @ w.T + b.reshape(1, -1)
        if i < len(weights) - 1:
            h = jnp.maximum(h, 0.0)
    if use_tanh:
        h = jnp.tanh(h)
    return h


if __name__ == "__main__":
    # Module config: 2-D coords -> embed -> in_size = 2 + 2*2 = 6.
    in_size = 6
    out_size = 3
    hidden_neurons = [32, 32]
    use_tanh = True

    key = jax.random.PRNGKey(0)
    key, xk = jax.random.split(key)

    n_points = 4096  # two 2048-point grid steps; still a small/fast test
    x = jax.random.uniform(xk, (n_points, 2), jnp.float32,
                           minval=-1.0, maxval=1.0)

    weights, biases = init_mlp_params(key, in_size, out_size, hidden_neurons)

    y, aux = mlp_forward(x, tuple(weights), tuple(biases),
                         use_tanh=use_tanh, block_n=2048)
    y = jax.block_until_ready(y)

    y_ref = mlp_reference(x, weights, biases, use_tanh=use_tanh)

    assert aux is None
    assert y.shape == (n_points, out_size)
    # bf16 MXU operands with f32 accumulation -> compare with a loose tolerance.
    max_err = float(jnp.max(jnp.abs(y - y_ref)))
    assert max_err < 2e-2, f"mismatch vs reference: max abs err = {max_err}"

    print("KERNEL_OK")
</pallas_src>

<mosaic_0001>
module attributes {stable_mosaic.version = 11 : i64} {
  func.func @kernel(%arg0: i32, %arg1: memref<2x2048xf32, #tpu.memory_space<vmem>>, %arg2: memref<32x2xbf16, #tpu.memory_space<vmem>>, %arg3: memref<32x2xbf16, #tpu.memory_space<vmem>>, %arg4: memref<32x2xbf16, #tpu.memory_space<vmem>>, %arg5: memref<32x1xf32, #tpu.memory_space<vmem>>, %arg6: memref<32x32xbf16, #tpu.memory_space<vmem>>, %arg7: memref<32x1xf32, #tpu.memory_space<vmem>>, %arg8: memref<3x32xbf16, #tpu.memory_space<vmem>>, %arg9: memref<3x1xf32, #tpu.memory_space<vmem>>, %arg10: memref<3x2048xf32, #tpu.memory_space<vmem>>) attributes {dimension_semantics = [#tpu.dimension_semantics<parallel>], iteration_bounds = array<i64: 2>, scalar_prefetch = 0 : i64, scratch_operands = 0 : i64, tpu.core_type = #tpu.core_type<tc>, window_params = [{transform_indices = @transform_0, window_bounds = array<i64: 2, 2048>}, {pipeline_mode = #tpu.pipeline_mode<synchronous>, transform_indices = @transform_1, window_bounds = array<i64: 32, 2>}, {pipeline_mode = #tpu.pipeline_mode<synchronous>, transform_indices = @transform_2, window_bounds = array<i64: 32, 2>}, {pipeline_mode = #tpu.pipeline_mode<synchronous>, transform_indices = @transform_3, window_bounds = array<i64: 32, 2>}, {pipeline_mode = #tpu.pipeline_mode<synchronous>, transform_indices = @transform_4, window_bounds = array<i64: 32, 1>}, {pipeline_mode = #tpu.pipeline_mode<synchronous>, transform_indices = @transform_5, window_bounds = array<i64: 32, 32>}, {pipeline_mode = #tpu.pipeline_mode<synchronous>, transform_indices = @transform_6, window_bounds = array<i64: 32, 1>}, {pipeline_mode = #tpu.pipeline_mode<synchronous>, transform_indices = @transform_7, window_bounds = array<i64: 3, 32>}, {pipeline_mode = #tpu.pipeline_mode<synchronous>, transform_indices = @transform_8, window_bounds = array<i64: 3, 1>}, {transform_indices = @transform_9, window_bounds = array<i64: 3, 2048>}]} {
    %c0 = arith.constant 0 : index
    %c0_0 = arith.constant 0 : index
    %0 = vector.load %arg1[%c0, %c0_0] : memref<2x2048xf32, #tpu.memory_space<vmem>>, vector<2x2048xf32>
    %c0_1 = arith.constant 0 : index
    %c0_2 = arith.constant 0 : index
    %1 = vector.load %arg2[%c0_1, %c0_2] : memref<32x2xbf16, #tpu.memory_space<vmem>>, vector<32x2xbf16>
    %c0_3 = arith.constant 0 : index
    %c0_4 = arith.constant 0 : index
    %2 = vector.load %arg3[%c0_3, %c0_4] : memref<32x2xbf16, #tpu.memory_space<vmem>>, vector<32x2xbf16>
    %c0_5 = arith.constant 0 : index
    %c0_6 = arith.constant 0 : index
    %3 = vector.load %arg4[%c0_5, %c0_6] : memref<32x2xbf16, #tpu.memory_space<vmem>>, vector<32x2xbf16>
    %c0_7 = arith.constant 0 : index
    %c0_8 = arith.constant 0 : index
    %4 = vector.load %arg5[%c0_7, %c0_8] : memref<32x1xf32, #tpu.memory_space<vmem>>, vector<32x1xf32>
    %5 = arith.truncf %0 : vector<2x2048xf32> to vector<2x2048xbf16>
    %cst = arith.constant dense<0.000000e+00> : vector<32x2048xf32>
    %6 = tpu.matmul %1, %5, %cst {dimension_numbers = #tpu.dot_dimension_numbers<[1], [0], [0], [1], [0, 0, 1, 1], [], []>} : vector<32x2xbf16>, vector<2x2048xbf16>, vector<32x2048xf32> -> vector<32x2048xf32>
    %7 = math.sin %0 : vector<2x2048xf32>
    %8 = arith.truncf %7 : vector<2x2048xf32> to vector<2x2048xbf16>
    %cst_9 = arith.constant dense<0.000000e+00> : vector<32x2048xf32>
    %9 = tpu.matmul %2, %8, %cst_9 {dimension_numbers = #tpu.dot_dimension_numbers<[1], [0], [0], [1], [0, 0, 1, 1], [], []>} : vector<32x2xbf16>, vector<2x2048xbf16>, vector<32x2048xf32> -> vector<32x2048xf32>
    %10 = arith.addf %6, %9 : vector<32x2048xf32>
    %11 = math.cos %0 : vector<2x2048xf32>
    %12 = arith.truncf %11 : vector<2x2048xf32> to vector<2x2048xbf16>
    %cst_10 = arith.constant dense<0.000000e+00> : vector<32x2048xf32>
    %13 = tpu.matmul %3, %12, %cst_10 {dimension_numbers = #tpu.dot_dimension_numbers<[1], [0], [0], [1], [0, 0, 1, 1], [], []>} : vector<32x2xbf16>, vector<2x2048xbf16>, vector<32x2048xf32> -> vector<32x2048xf32>
    %14 = arith.addf %10, %13 : vector<32x2048xf32>
    %15 = vector.broadcast %4 : vector<32x1xf32> to vector<32x2048xf32>
    %16 = arith.addf %14, %15 : vector<32x2048xf32>
    %cst_11 = arith.constant 0.000000e+00 : f32
    %17 = vector.broadcast %cst_11 : f32 to vector<32x2048xf32>
    %18 = arith.maximumf %16, %17 : vector<32x2048xf32>
    %c0_12 = arith.constant 0 : index
    %c0_13 = arith.constant 0 : index
    %19 = vector.load %arg6[%c0_12, %c0_13] : memref<32x32xbf16, #tpu.memory_space<vmem>>, vector<32x32xbf16>
    %c0_14 = arith.constant 0 : index
    %c0_15 = arith.constant 0 : index
    %20 = vector.load %arg7[%c0_14, %c0_15] : memref<32x1xf32, #tpu.memory_space<vmem>>, vector<32x1xf32>
    %21 = arith.truncf %18 : vector<32x2048xf32> to vector<32x2048xbf16>
    %cst_16 = arith.constant dense<0.000000e+00> : vector<32x2048xf32>
    %22 = tpu.matmul %19, %21, %cst_16 {dimension_numbers = #tpu.dot_dimension_numbers<[1], [0], [0], [1], [0, 0, 1, 1], [], []>} : vector<32x32xbf16>, vector<32x2048xbf16>, vector<32x2048xf32> -> vector<32x2048xf32>
    %23 = vector.broadcast %20 : vector<32x1xf32> to vector<32x2048xf32>
    %24 = arith.addf %22, %23 : vector<32x2048xf32>
    %cst_17 = arith.constant 0.000000e+00 : f32
    %25 = vector.broadcast %cst_17 : f32 to vector<32x2048xf32>
    %26 = arith.maximumf %24, %25 : vector<32x2048xf32>
    %c0_18 = arith.constant 0 : index
    %c0_19 = arith.constant 0 : index
    %27 = vector.load %arg8[%c0_18, %c0_19] : memref<3x32xbf16, #tpu.memory_space<vmem>>, vector<3x32xbf16>
    %c0_20 = arith.constant 0 : index
    %c0_21 = arith.constant 0 : index
    %28 = vector.load %arg9[%c0_20, %c0_21] : memref<3x1xf32, #tpu.memory_space<vmem>>, vector<3x1xf32>
    %29 = arith.truncf %26 : vector<32x2048xf32> to vector<32x2048xbf16>
    %cst_22 = arith.constant dense<0.000000e+00> : vector<3x2048xf32>
    %30 = tpu.matmul %27, %29, %cst_22 {dimension_numbers = #tpu.dot_dimension_numbers<[1], [0], [0], [1], [0, 0, 1, 1], [], []>} : vector<3x32xbf16>, vector<32x2048xbf16>, vector<3x2048xf32> -> vector<3x2048xf32>
    %31 = vector.broadcast %28 : vector<3x1xf32> to vector<3x2048xf32>
    %32 = arith.addf %30, %31 : vector<3x2048xf32>
    %33 = math.tanh %32 : vector<3x2048xf32>
    %c0_23 = arith.constant 0 : index
    %c0_24 = arith.constant 0 : index
    %34 = vector.load %arg10[%c0_23, %c0_24] : memref<3x2048xf32, #tpu.memory_space<vmem>>, vector<3x2048xf32>
    tpu.vector_store %arg10[%c0_23, %c0_24], %33 {strides = array<i32>} : memref<3x2048xf32, #tpu.memory_space<vmem>>, vector<3x2048xf32>,
    return
  }
  func.func @transform_0(%arg0: i32) -> (i32, i32) {
    %c0_i32 = arith.constant 0 : i32
    %c0_i32_0 = arith.constant 0 : i32
    return %c0_i32, %arg0 : i32, i32
  }
  func.func @transform_1(%arg0: i32) -> (i32, i32) {
    %c0_i32 = arith.constant 0 : i32
    %c0_i32_0 = arith.constant 0 : i32
    %c0_i32_1 = arith.constant 0 : i32
    return %c0_i32, %c0_i32_0 : i32, i32
  }
  func.func @transform_2(%arg0: i32) -> (i32, i32) {
    %c0_i32 = arith.constant 0 : i32
    %c0_i32_0 = arith.constant 0 : i32
    %c0_i32_1 = arith.constant 0 : i32
    return %c0_i32, %c0_i32_0 : i32, i32
  }
  func.func @transform_3(%arg0: i32) -> (i32, i32) {
    %c0_i32 = arith.constant 0 : i32
    %c0_i32_0 = arith.constant 0 : i32
    %c0_i32_1 = arith.constant 0 : i32
    return %c0_i32, %c0_i32_0 : i32, i32
  }
  func.func @transform_4(%arg0: i32) -> (i32, i32) {
    %c0_i32 = arith.constant 0 : i32
    %c0_i32_0 = arith.constant 0 : i32
    %c0_i32_1 = arith.constant 0 : i32
    return %c0_i32, %c0_i32_0 : i32, i32
  }
  func.func @transform_5(%arg0: i32) -> (i32, i32) {
    %c0_i32 = arith.constant 0 : i32
    %c0_i32_0 = arith.constant 0 : i32
    %c0_i32_1 = arith.constant 0 : i32
    return %c0_i32, %c0_i32_0 : i32, i32
  }
  func.func @transform_6(%arg0: i32) -> (i32, i32) {
    %c0_i32 = arith.constant 0 : i32
    %c0_i32_0 = arith.constant 0 : i32
    %c0_i32_1 = arith.constant 0 : i32
    return %c0_i32, %c0_i32_0 : i32, i32
  }
  func.func @transform_7(%arg0: i32) -> (i32, i32) {
    %c0_i32 = arith.constant 0 : i32
    %c0_i32_0 = arith.constant 0 : i32
    %c0_i32_1 = arith.constant 0 : i32
    return %c0_i32, %c0_i32_0 : i32, i32
  }
  func.func @transform_8(%arg0: i32) -> (i32, i32) {
    %c0_i32 = arith.constant 0 : i32
    %c0_i32_0 = arith.constant 0 : i32
    %c0_i32_1 = arith.constant 0 : i32
    return %c0_i32, %c0_i32_0 : i32, i32
  }
  func.func @transform_9(%arg0: i32) -> (i32, i32) {
    %c0_i32 = arith.constant 0 : i32
    %c0_i32_0 = arith.constant 0 : i32
    return %c0_i32, %arg0 : i32, i32
  }
}

</mosaic_0001>

<bundles_post_ra>
// kernel: mlp_forward.1
= control target key start
LH: loop header
LB: loop body
LE: loop exit
PB: predicated region body
PF: predicated region fallthrough
CT: control target
= control target key end

     0   :  { %14 = vsyncpa [#allocation3], 0  ;;  %s5808_s0 = inlined_call_operand.vmem [shape: f32[2,4096], index: 0, kind: input, shape index: {}]   ;;  %s5809_s1 = inlined_call_operand.vmem [shape: bf16[32,2], index: 1, kind: input, shape index: {}]   ;;  %s5810_s2 = inlined_call_operand.vmem [shape: bf16[32,2], index: 2, kind: input, shape index: {}]   ;;  %s5811_s3 = inlined_call_operand.vmem [shape: bf16[32,2], index: 3, kind: input, shape index: {}]   ;;  %s5812_s4 = inlined_call_operand.vmem [shape: f32[32,1], index: 4, kind: input, shape index: {}]   ;;  %s5813_s5 = inlined_call_operand.vmem [shape: bf16[32,32], index: 5, kind: input, shape index: {}]   ;;  %s5814_s6 = inlined_call_operand.vmem [shape: f32[32,1], index: 6, kind: input, shape index: {}]   ;;  %s5815_s7 = inlined_call_operand.vmem [shape: bf16[3,32], index: 7, kind: input, shape index: {}]   ;;  %s5816_s8 = inlined_call_operand.vmem [shape: f32[3,1], index: 8, kind: input, shape index: {}]   ;;  %s5817_s9 = inlined_call_operand.hbm [shape: f32[3,4096], index: 9, kind: output, shape index: {}]  }
   0x1   :  { %16 = vsyncpa [#allocation3 + $0x1], 0  ;;  %s4767_s30 = smov 0   ;;  %s4769_s10 = smov 0  }
   0x2   :  { %s4771_s11 = smov 0   ;;  %s4773_s12 = smov 0  }
   0x3 LB: > { %s4788_s13 = sadd.s32 4294967295, %s4706_s12   ;;  %s4238_s14 = sadd.s32 4294967294, %s4706_s12   ;;  %s4706_s12 = sphi %s4773_s12, %s5827_s12   ;;  %s4702_s11 = sphi %s4771_s11, %s5826_s11   ;;  %s4698_s10 = sphi %s4769_s10, %s5825_s10   ;;  %s4694_s30 = sphi %s4767_s30, %s5824_s30  }
   0x4   : > { %s4792_s15 = sadd.s32 1, %s4706_s12   ;;  %s223_s16 = sadd.s32 1, %s4702_s11 }
   0x5   : > { %s220_s17 = ssub.s32 %s4706_s12, %s4792_s15  ;;  %p233_p0 = scmp.ne.s32.totalorder %s4702_s11, %s4698_s10 }
   0x6   : > { %p221_p1 = scmp.eq.s32.totalorder %s220_s17, 0  ;;  %p234_p2 = scmp.eq.s32.totalorder %s4788_s13, 1 }
   0x7   : > { %p239_p3 = scmp.ne.s32.totalorder %s4698_s10, %s4694_s30  ;;  %p240_p4 = scmp.eq.s32.totalorder %s4238_s14, 1 }
   0x8   : > { %s4803_s18 = scalar_select %p221_p1, %s4702_s11, %s223_s16  }
   0x9   : > { %p4805_p5 = por %p234_p2, %p233_p0  ;;  %p4809_p6 = por %p240_p4, %p239_p3 }
   0xa   : > { %p4241_p7 = scmp.ge.s32.totalorder %s4706_s12, 1  ;;  %p291_p8 = scmp.lt.s32.totalorder %s4706_s12, 3 }
   0xc   : > { %p292_p9 = pnand %p4241_p7, %p291_p8 }
   0xd   : > { %s4243_s21 = sshll.u32 (!%p292_p9), %s4788_s13, 4  ;;  %v4708_v0 = vmov (!%p292_p9), 0   ;;  %v363_v21 = vlaneseq (!%p292_p9)  ;;  %v4709_v24 = vmov (!%p292_p9), 1983009808   ;;  %v4710_v34 = vmov (!%p292_p9), 683565275  }
   0xe   : > { %295 = sbr.rel (%p292_p9) target bundleno = 1020 (0x3fc), region = 56  ;;  %p328_p10 = scmp.lt.s32.totalorder (!%p292_p9), %s4243_s21, 31  ;;  %1077 = vmatprep.mubr.bf16.mxu0 (!%p292_p9), %v4708_v0  ;;  %1130 = vmatprep.mubr.bf16.mxu1 (!%p292_p9), %v4708_v0  ;;  %v4844_v25 = vunpack.c.l.s4 (!%p292_p9), %v4709_v24  ;;  %v4711_v36 = vmov (!%p292_p9), 2475754826   ;;  %v4712_v38 = vmov (!%p292_p9), 2131351028  }
   0xf   : > { %4578 = vset.pattern.permute.xlu0 (!%p292_p9), %v4708_v0  ;;  %4579 = vset.pattern.permute.xlu1 (!%p292_p9), %v4708_v0  ;;  %v4713_v40 = vmov (!%p292_p9), 2102212464   ;;  %v4714_v42 = vmov (!%p292_p9), 920167782   ;;  %v4715_v50 = vmov (!%p292_p9), 1326507024  }
  0x10   : > { %s324_s26 = sand.u32 (!%p292_p9), 1, %s4698_s10   ;;  %s4386_s29 = sshll.u32 (!%p292_p9), %s4788_s13, 10 }
  0x11   : > { %s4242_s27 = sshll.u32 (!%p292_p9), %s324_s26, 6  ;;  %s4716_s23 = smov (!%p292_p9), [#allocation2]  }
  0x12   : > { %s5737_s28 = scalar_lea.vmem (!%p292_p9), [#allocation2], %s4242_s27  ;;  %s4648_s24 = sshll.u32 (!%p292_p9), %s4716_s23, 4  ;;  %s4649_s24 = int_to_ptr.vmem [resolvable:$false] %s4648_s24 }
  0x13   : > { %s4179_s14 = sshll.u32 (!%p292_p9), %s5737_s28, 4  ;;  %s5765_s14 = int_to_ptr.vmem [resolvable:$true] %s4179_s14 }
  0x14   : > { %s4644_s13 = scalar_lea.vmem (!%p292_p9), %s5765_s14, 1024  ;;  %p4651_p0 = scmp.lt.s32.totalorder (!%p292_p9), %s5765_s14, %s4649_s24 }
  0x15   : > { %s5829_s21 = smov (!%p328_p10, %s4243_s21), 31  ;;  %p4645_p11 = scmp.ne.s32.totalorder %s5765_s14, %s4644_s13 }
  0x16   : > { %s4244_s22 = sshll.u32 %s5829_s21, 1  ;;  %s5763_s21 = scalar_lea.hbm %s5817_s9, %s4386_s29 }
  0x17   : > { %s4823_s25 = scalar_lea.vmem %s5808_s0, %s4244_s22  ;;  %s4165_s22 = scalar_lea.sflag [#allocation3], %s324_s26 }
  0x18   : > { %v4826_v1 = vld [vmem:[%s4823_s25] sm:$0xff]  ;;  %v4829_v2 = vld [vmem:[%s4823_s25 + $0x8] sm:$0xff]  ;;  %v4834_v5 = vld [vmem:[%s4823_s25 + $0x10] sm:$0xff]  ;;  %p4646_p12 = pnand %p4645_p11, %p4805_p5 }
  0x19   : > { %v459_v3 = vand.u32 2147483647, %v4826_v1  ;;  %v462_v4 = vand.u32 2139095040, %v4826_v1  ;;  %v563_v6 = vand.u32 2147483647, %v4829_v2  ;;  %v566_v7 = vand.u32 2139095040, %v4829_v2 }
  0x1a   : > { %v670_v12 = vand.u32 2139095040, %v4834_v5  ;;  %v667_v23 = vand.u32 2147483647, %v4834_v5  ;;  %vm461_vm13 = vcmp.lt.s32.totalorder %v4826_v1, 0  ;;  %p4647_p13 = pneg %p4646_p12 }
  0x1b   : > { %v463_v8 = vshrl.u32 %v462_v4, 23  ;;  %v466_v9 = vand.u32 8388607, %v459_v3  ;;  %v567_v10 = vshrl.u32 %v566_v7, 23  ;;  %v570_v11 = vand.u32 8388607, %v563_v6 }
  0x1c   : > { %v671_v15 = vshrl.u32 %v670_v12, 23  ;;  %vm4958_vm15 = vcmp.le.f32.partialorder %v459_v3, 0.7853982 }
  0x1d   : > { %v4245_v13 = vadd.s32 4294967169, %v463_v8  ;;  %v4249_v14 = vadd.s32 4294967169, %v567_v10  ;;  %v467_v17 = vor.u32 8388608, %v466_v9  ;;  %v571_v18 = vor.u32 8388608, %v570_v11 }
  0x1e   : > { %v4253_v20 = vadd.s32 4294967169, %v671_v15 }
  0x1f   : > { %v469_v16 = vadd.s32 1, %v4245_v13  ;;  %v573_v19 = vadd.s32 1, %v4249_v14  ;;  %v4846_v29 = vshll.u32 %v467_v17, 8  ;;  %v4848_v31 = vshll.u32 %v571_v18, 8 }
  0x20   : > { %v4850_v32 = vadd.s32 1, %v4253_v20 }
  0x21   : > { %vm470_vm0 = vcmp.gt.s32.totalorder %v469_v16, 0  ;;  %vm574_vm1 = vcmp.gt.s32.totalorder %v573_v19, 0 }
  0x22   : > { %v471_v22 = vsel %vm470_vm0, %v469_v16, 0  ;;  %v575_v28 = vsel %vm574_vm1, %v573_v19, 0  ;;  %vm678_vm6 = vcmp.gt.s32.totalorder %v4850_v32, 0 }
  0x23   : > { %v472_v26 = vshrl.u32 %v471_v22, 5  ;;  %v473_v27 = vand.u32 31, %v471_v22  ;;  %v577_v30 = vand.u32 31, %v575_v28  ;;  %v4857_v44 = vshrl.u32 %v575_v28, 5 }
  0x25   : > { %v474_v33 = vsub.s32 32, %v473_v27  ;;  %v476_v35 = vshll.u32 %v4710_v34, %v473_v27  ;;  %v479_v37 = vshll.u32 %v4711_v36, %v473_v27  ;;  %v482_v39 = vshll.u32 %v4712_v38, %v473_v27 }
  0x26   : > { %v485_v41 = vshll.u32 %v4713_v40, %v473_v27  ;;  %v488_v43 = vshll.u32 %v4714_v42, %v473_v27  ;;  %vm491_vm2 = vcmp.lt.s32.totalorder %v472_v26, 1  ;;  %vm492_vm3 = vcmp.lt.s32.totalorder %v472_v26, 2 }
  0x27   : > { %v475_v45 = vshrl.u32 %v4710_v34, %v474_v33  ;;  %v477_v46 = vshrl.u32 %v4711_v36, %v474_v33  ;;  %v480_v47 = vshrl.u32 %v4712_v38, %v474_v33  ;;  %v483_v48 = vshrl.u32 %v4713_v40, %v474_v33 }
  0x28   : > { %v486_v49 = vshrl.u32 %v4714_v42, %v474_v33  ;;  %v489_v51 = vshrl.u32 %v4715_v50, %v474_v33  ;;  %vm494_vm4 = vcmp.lt.s32.totalorder %v472_v26, 4  ;;  %v578_v55 = vsub.s32 32, %v577_v30 }
  0x29   : > { %v478_v52 = vor.u32 %v477_v46, %v476_v35  ;;  %v481_v53 = vor.u32 %v480_v47, %v479_v37  ;;  %v484_v54 = vor.u32 %v483_v48, %v482_v39  ;;  %vm493_vm5 = vcmp.lt.s32.totalorder %v472_v26, 3 }
  0x2a   : > { %v487_v56 = vor.u32 %v486_v49, %v485_v41  ;;  %v490_v57 = vor.u32 %v489_v51, %v488_v43  ;;  %v580_v58 = vshll.u32 %v4710_v34, %v577_v30  ;;  %v583_v8 = vshll.u32 %v4711_v36, %v577_v30 }
  0x2b   : > { %v495_v59 = vsel %vm491_vm2, %v475_v45, %v478_v52  ;;  %v496_v60 = vsel %vm494_vm4, %v484_v54, 2102212464  ;;  %v499_v61 = vsel %vm491_vm2, %v478_v52, %v481_v53  ;;  %v503_v62 = vsel %vm491_vm2, %v481_v53, %v484_v54 }
  0x2c   : > { %v497_v63 = vsel %vm493_vm5, %v481_v53, %v496_v60  ;;  %v500_v4 = vsel %vm494_vm4, %v487_v56, 920167782  ;;  %v504_v7 = vsel %vm494_vm4, %v490_v57, 1326507024  ;;  %v579_v11 = vshrl.u32 %v4710_v34, %v578_v55 }
  0x2d   : > { %v501_v9 = vsel %vm493_vm5, %v484_v54, %v500_v4  ;;  %v505_v10 = vsel %vm493_vm5, %v487_v56, %v504_v7  ;;  %v581_v12 = vshrl.u32 %v4711_v36, %v578_v55  ;;  %v498_v13 = vsel %vm492_vm3, %v495_v59, %v497_v63 }
  0x2e   : > { %v502_v14 = vsel %vm492_vm3, %v499_v61, %v501_v9  ;;  %v506_v15 = vsel %vm492_vm3, %v503_v62, %v505_v10  ;;  %v584_v16 = vshrl.u32 %v4712_v38, %v578_v55  ;;  %v586_v27 = vshll.u32 %v4712_v38, %v577_v30 }
  0x2f   : > { %v4878_v17 = vmul.u32.u64.low %v4846_v29, %v506_v15  ;;  %v4879_v18 = vmul.u32.u64.high %v4846_v29, %v506_v15, %v4878_v17  ;;  %v4882_v19 = vmul.u32.u64.low %v4846_v29, %v502_v14  ;;  %v4883_v20 = vmul.u32.u64.high %v4846_v29, %v502_v14, %v4882_v19 }
  0x30   : > { %v582_v22 = vor.u32 %v581_v12, %v580_v58  ;;  %v585_v24 = vor.u32 %v584_v16, %v583_v8  ;;  %v587_v28 = vshrl.u32 %v4713_v40, %v578_v55  ;;  %v589_v26 = vshll.u32 %v4713_v40, %v577_v30  ;;  %v4925_v12 = vld [vmem:[%s4823_s25 + $0x18] sm:$0xff] }
  0x31   : > { %v590_v33 = vshrl.u32 %v4714_v42, %v578_v55  ;;  %v592_v35 = vshll.u32 %v4714_v42, %v577_v30  ;;  %v593_v37 = vshrl.u32 %v4715_v50, %v578_v55  ;;  %v514_v39 = vmul.u32 %v4846_v29, %v498_v13 }
  0x32   : > { %v588_v41 = vor.u32 %v587_v28, %v586_v27  ;;  %vm595_vm7 = vcmp.lt.s32.totalorder %v4857_v44, 1  ;;  %vm596_vm8 = vcmp.lt.s32.totalorder %v4857_v44, 2  ;;  %vm516_vm9 = vc.u32 %v4879_v18, %v4882_v19 }
  0x33   : > { %v517_v43 = vadd.s32 1, %v4883_v20  ;;  %v591_v45 = vor.u32 %v590_v33, %v589_v26  ;;  %vm597_vm10 = vcmp.lt.s32.totalorder %v4857_v44, 3  ;;  %v594_v46 = vor.u32 %v593_v37, %v592_v35 }
  0x34   : > { %vm598_vm11 = vcmp.lt.s32.totalorder %v4857_v44, 4  ;;  %v599_v30 = vsel %vm595_vm7, %v579_v11, %v582_v22  ;;  %v603_v47 = vsel %vm595_vm7, %v582_v22, %v585_v24  ;;  %v607_v51 = vsel %vm595_vm7, %v585_v24, %v588_v41 }
  0x35   : > { %v518_v29 = vsel %vm516_vm9, %v517_v43, %v4883_v20  ;;  %v600_v48 = vsel %vm598_vm11, %v588_v41, 2102212464  ;;  %v604_v49 = vsel %vm598_vm11, %v591_v45, 920167782  ;;  %v608_v55 = vsel %vm598_vm11, %v594_v46, 1326507024 }
  0x36   : > { %v519_v52 = vadd.s32 %v518_v29, %v514_v39  ;;  %v601_v53 = vsel %vm597_vm10, %v585_v24, %v600_v48  ;;  %v605_v54 = vsel %vm597_vm10, %v588_v41, %v604_v49  ;;  %v609_v58 = vsel %vm597_vm10, %v591_v45, %v608_v55 }
  0x37   : > { %v602_v56 = vsel %vm596_vm8, %v599_v30, %v601_v53  ;;  %v606_v57 = vsel %vm596_vm8, %v603_v47, %v605_v54  ;;  %v679_v59 = vsel %vm678_vm6, %v4850_v32, 0  ;;  %v610_v61 = vsel %vm596_vm8, %v607_v51, %v609_v58 }
  0x38   : > { %v520_v60 = vadd.s32 536870912, %v519_v52  ;;  %v4911_v62 = vmul.u32.u64.low %v4848_v31, %v606_v57  ;;  %v4912_v63 = vmul.u32.u64.high %v4848_v31, %v606_v57, %v4911_v62  ;;  %v674_v8 = vand.u32 8388607, %v667_v23 }
  0x39   : > { %v4916_v4 = vmul.u32.u64.low %v4848_v31, %v610_v61  ;;  %v4917_v7 = vmul.u32.u64.high %v4848_v31, %v610_v61, %v4916_v4  ;;  %v681_v10 = vand.u32 31, %v679_v59  ;;  %v362_v32 = vunpack.c.0.s8 %v4844_v25 }
  0x3a   : > { %v521_v9 = vshrl.u32 %v520_v60, 30  ;;  %v364_v11 = vshrl.u32 %v363_v21, 7  ;;  %v618_v44 = vmul.u32 %v4848_v31, %v602_v56  ;;  %v621_v14 = vadd.s32 1, %v4912_v63 }
  0x3b   : > { %v682_v15 = vsub.s32 32, %v681_v10  ;;  %vm620_vm12 = vc.u32 %v4917_v7, %v4911_v62  ;;  %v675_v16 = vor.u32 8388608, %v674_v8  ;;  %v774_v25 = vand.u32 2139095040, %v4925_v12 }
  0x3c   : > { %v522_v13 = vshll.u32 %v521_v9, 30  ;;  %v622_v20 = vsel %vm620_vm12, %v621_v14, %v4912_v63  ;;  %v4934_v22 = vsub.s32 %v362_v32, %v364_v11  ;;  %v4937_v31 = vshrl.u32 %v679_v59, 5 }
  0x3d   : > { %v623_v21 = vadd.s32 %v622_v20, %v618_v44  ;;  %v684_v27 = vshll.u32 %v4710_v34, %v681_v10  ;;  %v685_v28 = vshrl.u32 %v4711_v36, %v682_v15  ;;  %v771_v26 = vand.u32 2147483647, %v4925_v12 }
  0x3e   : > { %v4930_v17 = vsub.s32 %v519_v52, %v522_v13  ;;  %v687_v35 = vshll.u32 %v4711_v36, %v681_v10  ;;  %v688_v37 = vshrl.u32 %v4712_v38, %v682_v15  ;;  %v4945_v39 = vshll.u32 %v675_v16, 8 }
  0x3f   : > { %v624_v33 = vadd.s32 536870912, %v623_v21  ;;  %v690_v43 = vshll.u32 %v4712_v38, %v681_v10  ;;  %v691_v45 = vshrl.u32 %v4713_v40, %v682_v15  ;;  %v775_v46 = vshrl.u32 %v774_v25, 23 }
  0x40   : > { %v525_v24 = vsub.s32 0, %v4930_v17  ;;  %v515_v30 = vadd.s32 %v4882_v19, %v4879_v18  ;;  %v693_v29 = vshll.u32 %v4713_v40, %v681_v10  ;;  %vm699_vm14 = vcmp.lt.s32.totalorder %v4937_v31, 1 }
  0x41   : > { %v4952_v47 = vshrl.u32 %v624_v33, 30  ;;  %v545_v51 = vsub.s32 4, %v521_v9  ;;  %v683_v52 = vshrl.u32 %v4710_v34, %v682_v15  ;;  %v686_v53 = vor.u32 %v685_v28, %v684_v27 }
  0x42   : > { %v4246_v41 = vmin.u32 %v525_v24, %v4930_v17  ;;  %v689_v18 = vor.u32 %v688_v37, %v687_v35  ;;  %v694_v19 = vshrl.u32 %v4714_v42, %v682_v15  ;;  %v696_v55 = vshll.u32 %v4714_v42, %v681_v10 }
  0x43   : > { %v626_v54 = vshll.u32 %v4952_v47, 30  ;;  %v692_v57 = vor.u32 %v691_v45, %v690_v43  ;;  %v697_v58 = vshrl.u32 %v4715_v50, %v682_v15  ;;  %vm700_vm0 = vcmp.lt.s32.totalorder %v4937_v31, 2 }
  0x44   : > { %v527_v49 = vclz %v4246_v41  ;;  %v695_v59 = vor.u32 %v694_v19, %v693_v29  ;;  %vm701_vm1 = vcmp.lt.s32.totalorder %v4937_v31, 3  ;;  %vm702_vm2 = vcmp.lt.s32.totalorder %v4937_v31, 4 }
  0x45   : > { %v4968_v3 = vsub.s32 %v623_v21, %v626_v54  ;;  %v546_v60 = vsel %vm461_vm13, %v545_v51, %v521_v9  ;;  %v698_v61 = vor.u32 %v697_v58, %v696_v55  ;;  %v704_v63 = vsel %vm702_vm2, %v692_v57, 2102212464 }
  0x46   : > { %v4247_v56 = vadd.s32 4294967294, %v527_v49  ;;  %v703_v10 = vsel %vm699_vm14, %v683_v52, %v686_v53  ;;  %v707_v32 = vsel %vm699_vm14, %v686_v53, %v689_v18  ;;  %v708_v9 = vsel %vm702_vm2, %v695_v59, 920167782 }
  0x47   : > { %v629_v8 = vsub.s32 0, %v4968_v3  ;;  %v705_v15 = vsel %vm701_vm1, %v689_v18, %v704_v63  ;;  %v709_v16 = vsel %vm701_vm1, %v692_v57, %v708_v9  ;;  %v711_v20 = vsel %vm699_vm14, %v689_v18, %v692_v57 }
  0x48   : > { %vm4248_vm3 = vcmp.lt.s32.totalorder %v4247_v56, 0  ;;  %v712_v24 = vsel %vm702_vm2, %v698_v61, 1326507024  ;;  %v548_v27 = vsel %vm4958_vm15, 0, %v546_v60  ;;  %v4257_v33 = vadd.s32 4294967169, %v775_v46 }
  0x49   : > { %v530_v4 = vsel %vm4248_vm3, 0, %v4247_v56  ;;  %v4250_v14 = vmin.u32 %v629_v8, %v4968_v3  ;;  %v4999_v35 = vand.u32 8388607, %v771_v26  ;;  %vm565_vm4 = vcmp.lt.s32.totalorder %v4829_v2, 0 }
  0x4a   : > { %v531_v11 = vsub.s32 32, %v530_v4  ;;  %v532_v44 = vshll.u32 %v4930_v17, %v530_v4  ;;  %v535_v13 = vsub.s32 4294967266, %v530_v4  ;;  %v710_v17 = vsel %vm700_vm0, %v707_v32, %v709_v16 }
  0x4b   : > { %v631_v28 = vclz %v4250_v14  ;;  %v706_v43 = vsel %vm700_vm0, %v703_v10, %v705_v15  ;;  %v713_v45 = vsel %vm701_vm1, %v695_v59, %v712_v24  ;;  %v552_v18 = vadd.s32 3, %v548_v27 }
  0x4c   : > { %v533_v25 = vshrl.u32 %v515_v30, %v531_v11  ;;  %v536_v21 = vadd.s32 127, %v535_v13  ;;  %v714_v29 = vsel %vm700_vm0, %v711_v20, %v713_v45  ;;  %vm5019_vm5 = vcmp.le.f32.partialorder %v563_v6, 0.7853982 }
  0x4d   : > { %v4251_v30 = vadd.s32 4294967294, %v631_v28  ;;  %v5009_v46 = vmul.u32.u64.low %v4945_v39, %v710_v17  ;;  %v5010_v49 = vmul.u32.u64.high %v4945_v39, %v710_v17, %v5009_v46  ;;  %v619_v31 = vadd.s32 %v4911_v62, %v4917_v7 }
  0x4e   : > { %v534_v37 = vor.u32 %v533_v25, %v532_v44  ;;  %v537_v41 = vshll.u32 %v536_v21, 23  ;;  %v5014_v53 = vmul.u32.u64.low %v4945_v39, %v714_v29  ;;  %v5015_v54 = vmul.u32.u64.high %v4945_v39, %v714_v29, %v5014_v53 }
  0x4f   : > { %vm4252_vm6 = vcmp.lt.s32.totalorder %v4251_v30, 0  ;;  %v781_v55 = vadd.s32 1, %v4257_v33  ;;  %v649_v58 = vsub.s32 4, %v4952_v47  ;;  %v722_v59 = vmul.u32 %v4945_v39, %v706_v43 }
  0x50   : > { %v538_v51 = vor.u32 4788187, %v537_v41  ;;  %v541_v52 = vcvt.s32.f32 %v534_v37  ;;  %v634_v57 = vsel %vm4252_vm6, 0, %v4251_v30  ;;  %v725_v6 = vadd.s32 1, %v5010_v49 }
  0x51   : > { %v635_v60 = vsub.s32 32, %v634_v57  ;;  %v636_v61 = vshll.u32 %v4968_v3, %v634_v57  ;;  %v639_v63 = vsub.s32 4294967266, %v634_v57  ;;  %vm724_vm7 = vc.u32 %v5015_v54, %v5009_v46 }
  0x52   : > { %v539_v56 = vand.u32 2147483647, %v538_v51  ;;  %v779_v62 = vor.u32 8388608, %v4999_v35  ;;  %vm782_vm8 = vcmp.gt.s32.totalorder %v781_v55, 0  ;;  %v726_v10 = vsel %vm724_vm7, %v725_v6, %v5010_v49 }
  0x53   : > { %v637_v7 = vshrl.u32 %v619_v31, %v635_v60  ;;  %v640_v8 = vadd.s32 127, %v639_v63  ;;  %v783_v32 = vsel %vm782_vm8, %v781_v55, 0  ;;  %v5033_v39 = vand.u32 3, %v548_v27 }
  0x54   : > { %v542_v4 = vmul.f32 %v541_v52, %v539_v56  ;;  %v727_v44 = vadd.s32 %v726_v10, %v722_v59  ;;  %v785_v3 = vand.u32 31, %v783_v32  ;;  %v5035_v13 = vand.u32 3, %v552_v18 }
  0x55   : > { %v638_v9 = vor.u32 %v637_v7, %v636_v61  ;;  %v641_v14 = vshll.u32 %v640_v8, 23  ;;  %v650_v15 = vsel %vm565_vm4, %v649_v58, %v4952_v47  ;;  %vm2055_vm9 = vcmp.eq.s32.totalorder %v5033_v39, 2 }
  0x56   : > { %v543_v11 = vxor.u32 2147483648, %v542_v4  ;;  %v728_v20 = vadd.s32 536870912, %v727_v44  ;;  %v786_v25 = vsub.s32 32, %v785_v3  ;;  %v788_v21 = vshll.u32 %v4710_v34, %v785_v3 }
  0x57   : > { %v642_v24 = vor.u32 4788187, %v641_v14  ;;  %v645_v27 = vcvt.s32.f32 %v638_v9  ;;  %v791_v28 = vshll.u32 %v4711_v36, %v785_v3  ;;  %v5049_v33 = vsel %vm5019_vm5, 0, %v650_v15 }
  0x58   : > { %v544_v16 = vsel %vm461_vm13, %v543_v11, %v542_v4  ;;  %v5051_v47 = vshrl.u32 %v728_v20, 30  ;;  %v789_v37 = vshrl.u32 %v4711_v36, %v786_v25  ;;  %v792_v43 = vshrl.u32 %v4712_v38, %v786_v25 }
  0x59   : > { %v547_v17 = vsel %vm4958_vm15, %v4826_v1, %v544_v16  ;;  %v643_v41 = vand.u32 2147483647, %v642_v24  ;;  %v794_v48 = vshll.u32 %v4712_v38, %v785_v3  ;;  %v784_v30 = vshrl.u32 %v783_v32, 5 }
  0x5a   : > { %4592 = vcosq.f32 %v547_v17  ;;  %v730_v45 = vshll.u32 %v5051_v47, 30  ;;  %v790_v29 = vor.u32 %v789_v37, %v788_v21  ;;  %v795_v49 = vshrl.u32 %v4713_v40, %v786_v25 }
  0x5b   : > { %4594 = vsinq.f32 %v547_v17  ;;  %vm2052_vm10 = vcmp.eq.s32.totalorder %v5033_v39, 0  ;;  %v646_v51 = vmul.f32 %v645_v27, %v643_v41  ;;  %v793_v52 = vor.u32 %v792_v43, %v791_v28 }
  0x5c   : > { %v797_v36 = vshll.u32 %v4713_v40, %v785_v3  ;;  %v798_v53 = vshrl.u32 %v4714_v42, %v786_v25  ;;  %vm554_vm11 = vcmp.lt.s32.totalorder %v5035_v13, 2  ;;  %vm2051_vm12 = vcmp.lt.s32.totalorder %v5033_v39, 2 }
  0x5d   : > { %v5064_v38 = vsub.s32 %v727_v44, %v730_v45  ;;  %v787_v18 = vshrl.u32 %v4710_v34, %v786_v25  ;;  %v796_v31 = vor.u32 %v795_v49, %v794_v48  ;;  %v800_v55 = vshll.u32 %v4714_v42, %v785_v3 }
  0x5e   : > { %vm551_vm13 = vweird.f32 %v4826_v1  ;;  %vm555_vm14 = vcmp.eq.s32.totalorder %v5035_v13, 0  ;;  %v647_v56 = vxor.u32 2147483648, %v646_v51  ;;  %v799_v57 = vor.u32 %v798_v53, %v797_v36 }
  0x5f   : > { %v801_v40 = vshrl.u32 %v4715_v50, %v786_v25  ;;  %vm558_vm15 = vcmp.eq.s32.totalorder %v5035_v13, 2  ;;  %v656_v58 = vadd.s32 3, %v5049_v33  ;;  %v733_v59 = vsub.s32 0, %v5064_v38 }
  0x60   : > { %vm803_vm0 = vcmp.lt.s32.totalorder %v784_v30, 1  ;;  %v648_v34 = vsel %vm565_vm4, %v647_v56, %v646_v51  ;;  %vm804_vm1 = vcmp.lt.s32.totalorder %v784_v30, 2  ;;  %vm806_vm2 = vcmp.lt.s32.totalorder %v784_v30, 4 }
  0x61   : > { %v802_v60 = vor.u32 %v801_v40, %v800_v55  ;;  %v651_v42 = vsel %vm5019_vm5, %v4829_v2, %v648_v34  ;;  %v4254_v61 = vmin.u32 %v733_v59, %v5064_v38  ;;  %vm805_vm3 = vcmp.lt.s32.totalorder %v784_v30, 3 }
  0x62   : > { %v807_v50 = vsel %vm803_vm0, %v787_v18, %v790_v29  ;;  %4596 = vcosq.f32 %v651_v42  ;;  %v808_v63 = vsel %vm806_vm2, %v796_v31, 2102212464  ;;  %v811_v6 = vsel %vm803_vm0, %v790_v29, %v793_v52 }
  0x63   : > { %v812_v4 = vsel %vm806_vm2, %v799_v57, 920167782  ;;  %4598 = vsinq.f32 %v651_v42  ;;  %v5084_v8 = vand.u32 3, %v656_v58  ;;  %v735_v10 = vclz %v4254_v61 }
  0x64   : > { %v4593_v7 = vpop.eup %4592  ;;  %v5088_v19 = vshll.u32 %v779_v62, 8  ;;  %v723_v44 = vadd.s32 %v5009_v46, %v5015_v54  ;;  %v809_v3 = vsel %vm805_vm3, %v793_v52, %v808_v63  ;;  %v813_v9 = vsel %vm805_vm3, %v796_v31, %v812_v4  ;;  %v5146_v63 = vld [vmem:[%s5810_s2] sm:$0xff]  }
  0x65   : > { %v4595_v32 = vpop.eup %4594  ;;  %v559_v11 = vxor.u32 2147483648, %v4593_v7  ;;  %v4255_v15 = vadd.s32 4294967294, %v735_v10  ;;  %v5095_v16 = vsel %vm804_vm1, %v807_v50, %v809_v3  ;;  %v814_v20 = vsel %vm804_vm1, %v811_v6, %v813_v9 }
  0x66   : > { %v556_v14 = vxor.u32 2147483648, %v4595_v32  ;;  %v815_v25 = vsel %vm803_vm0, %v793_v52, %v796_v31  ;;  %v816_v46 = vsel %vm806_vm2, %v802_v60, 1326507024  ;;  %vm996_vm5 = vcmask 1040384  }
  0x67   : > { %v560_v35 = vsel %vm558_vm15, %v559_v11, %v4595_v32  ;;  %v2057_v62 = vsel %vm2055_vm9, %v559_v11, %v4595_v32  ;;  %vm4256_vm4 = vcmp.lt.s32.totalorder %v4255_v15, 0  ;;  %v817_v17 = vsel %vm805_vm3, %v799_v57, %v816_v46 }
  0x68   : > { %v557_v54 = vsel %vm555_vm14, %v4593_v7, %v556_v14  ;;  %v2054_v21 = vsel %vm2052_vm10, %v4593_v7, %v556_v14  ;;  %v738_v28 = vsel %vm4256_vm4, 0, %v4255_v15  ;;  %v818_v37 = vsel %vm804_vm1, %v815_v25, %v817_v17 }
  0x69   : > { %v561_v24 = vsel %vm554_vm11, %v557_v54, %v560_v35  ;;  %v2058_v27 = vsel %vm2051_vm12, %v2054_v21, %v2057_v62  ;;  %v739_v48 = vsub.s32 32, %v738_v28  ;;  %v740_v45 = vshll.u32 %v5064_v38, %v738_v28 }
  0x6a   : > { %v562_v41 = vsel %vm551_vm13, nan, %v561_v24  ;;  %v5118_v43 = vsel %vm551_vm13, nan, %v2058_v27  ;;  %vm655_vm6 = vweird.f32 %v4829_v2  ;;  %v743_v49 = vsub.s32 4294967266, %v738_v28 }
  0x6b   : > { %v886_v29 = vrot.slane %v562_v41, %v4934_v22  ;;  %v879_v13 = vcombine.high %v562_v41, %v562_v41  ;;  %v741_v39 = vshrl.u32 %v723_v44, %v739_v48  ;;  %vm662_vm7 = vcmp.eq.s32.totalorder %v5084_v8, 2  ;;  %v5189_v41 = vld [vmem:[%s5810_s2 + $0x8] sm:$0xff]  }
  0x6c   : > { %v5124_v30 = vmul.u32.u64.low %v5088_v19, %v818_v37  ;;  %v5125_v51 = vmul.u32.u64.high %v5088_v19, %v818_v37, %v5124_v30  ;;  %v5127_v52 = vpop.eup %4596  ;;  %vm659_vm8 = vcmp.eq.s32.totalorder %v5084_v8, 0  ;;  %v744_v56 = vadd.s32 127, %v743_v49 }
  0x6d   : > { %v894_v36 = vcombine.high %v886_v29, %v886_v29  ;;  %v963_v53 = vpack.c.bf16 %v886_v29, %v886_v29  ;;  %v893_v18 = vrot.slane %v879_v13, %v4934_v22  ;;  %v5131_v38 = vpop.eup %4598  ;;  %v663_v31 = vxor.u32 2147483648, %v5127_v52 }
  0x6e   : > { %v742_v55 = vor.u32 %v741_v39, %v740_v45  ;;  %vm658_vm9 = vcmp.lt.s32.totalorder %v5084_v8, 2  ;;  %v660_v34 = vxor.u32 2147483648, %v5131_v38  ;;  %v745_v42 = vshll.u32 %v744_v56, 23 }
  0x6f   : > { %v964_v57 = vpack.c.bf16 %v894_v36, %v894_v36  ;;  %v998_v40 = vsel %vm996_vm5, %v963_v53, 0  ;;  %v895_v58 = vcombine.high %v893_v18, %v893_v18  ;;  %v965_v59 = vpack.c.bf16 %v893_v18, %v893_v18 }
  0x70   : > { %v664_v60 = vsel %vm662_vm7, %v663_v31, %v5131_v38  ;;  %v5149_v6 = vmul.u32.u64.low %v5088_v19, %v814_v20  ;;  %v5150_v4 = vmul.u32.u64.high %v5088_v19, %v814_v20, %v5149_v6  ;;  %vm989_vm10 = vcmask 15360  }
  0x71   : > { %4263 = vmatprep.subr.msk.bf16.mxu0 %vm996_vm5, %v964_v57  ;;  %v966_v61 = vpack.c.bf16 %v895_v58, %v895_v58  ;;  %v1004_v50 = vsel %vm996_vm5, %v965_v59, 0  ;;  %v661_v7 = vsel %vm659_vm8, %v5127_v52, %v660_v34  ;;  %v746_v10 = vor.u32 4788187, %v745_v42 }
  0x72   : > { %1046 = vmatpush1.bf16.msra.mxu0 %v998_v40  ;;  %v749_v32 = vcvt.s32.f32 %v742_v55  ;;  %v665_v11 = vsel %vm658_vm9, %v661_v7, %v664_v60  ;;  %v5159_v44 = vadd.s32 %v5149_v6, %v5125_v51  ;;  %vm828_vm11 = vc.u32 %v5125_v51, %v5149_v6 }
  0x73   : > { %4266 = vmatprep.subr.msk.bf16.mxu1 %vm996_vm5, %v966_v61  ;;  %v666_v3 = vsel %vm655_vm6, nan, %v665_v11  ;;  %v747_v9 = vand.u32 2147483647, %v746_v10  ;;  %v753_v14 = vsub.s32 4, %v5051_v47  ;;  %v826_v8 = vmul.u32 %v5088_v19, %v5095_v16 }
  0x74   : > { %1099 = vmatpush1.bf16.msra.mxu1 %v1004_v50  ;;  %v903_v15 = vrot.slane %v666_v3, %v4934_v22  ;;  %v896_v20 = vcombine.high %v666_v3, %v666_v3  ;;  %v829_v35 = vadd.s32 1, %v5150_v4  ;;  %vm669_vm12 = vcmp.lt.s32.totalorder %v4834_v5, 0 }
  0x75   : > { %4264 = vmatmul.mubr.msk.bf16.vlgmr.msra.gmra.mrb[0].mxu0 %vm989_vm10, %v5146_v63  ;;  %v750_v62 = vmul.f32 %v749_v32, %v747_v9  ;;  %vm668_vm13 = vcmp.le.f32.partialorder %v667_v23, 0.7853982  ;;  %v754_v21 = vsel %vm669_vm12, %v753_v14, %v5051_v47  ;;  %vm759_vm1 = vweird.f32 %v4834_v5 }
  0x76   : > { %1087 = vmatprep.mubr.bf16.mxu0 %v4708_v0  ;;  %v911_v25 = vcombine.high %v903_v15, %v903_v15  ;;  %v910_v46 = vrot.slane %v896_v20, %v4934_v22  ;;  %v967_v19 = vpack.c.bf16 %v903_v15, %v903_v15  ;;  %v830_v16 = vsel %vm828_vm11, %v829_v35, %v5150_v4 }
  0x77   : > { %4267 = vmatmul.mubr.msk.bf16.vlgmr.msra.gmra.mrb[0].mxu1 %vm989_vm10, %v5146_v63  ;;  %v751_v54 = vxor.u32 2147483648, %v750_v62  ;;  %v831_v17 = vadd.s32 %v830_v16, %v826_v8  ;;  %v5196_v13 = vsel %vm668_vm13, 0, %v754_v21  ;;  %v2153_v42 = vand.u32 3, %v5049_v33 }
  0x78   : > { %1140 = vmatprep.mubr.bf16.mxu1 %v4708_v0  ;;  %v968_v24 = vpack.c.bf16 %v911_v25, %v911_v25  ;;  %v912_v27 = vcombine.high %v910_v46, %v910_v46  ;;  %v1010_v28 = vsel %vm996_vm5, %v967_v19, 0  ;;  %v969_v37 = vpack.c.bf16 %v910_v46, %v910_v46 }
  0x79   : > { %v752_v48 = vsel %vm669_vm12, %v751_v54, %v750_v62  ;;  %v832_v23 = vadd.s32 536870912, %v831_v17  ;;  %v760_v49 = vadd.s32 3, %v5196_v13  ;;  %vm2154_vm3 = vcmp.lt.s32.totalorder %v2153_v42, 2 }
  0x7a   : > { %4269 = vmatprep.subr.msk.bf16.mxu0 %vm996_vm5, %v968_v24  ;;  %v970_v45 = vpack.c.bf16 %v912_v27, %v912_v27  ;;  %v1016_v47 = vsel %vm996_vm5, %v969_v37, 0  ;;  %v755_v29 = vsel %vm668_vm13, %v4834_v5, %v752_v48  ;;  %vm2155_vm4 = vcmp.eq.s32.totalorder %v2153_v42, 0 }
  0x7b   : > { %1152 = vmatpush1.bf16.msra.mxu0 %v1010_v28  ;;  %4600 = vcosq.f32 %v755_v29  ;;  %v5198_v39 = vshrl.u32 %v832_v23, 30  ;;  %v761_v36 = vand.u32 3, %v760_v49  ;;  %v2157_v33 = vsel %vm2155_vm4, %v5127_v52, %v660_v34 }
  0x7c   : > { %4272 = vmatprep.subr.msk.bf16.mxu1 %vm996_vm5, %v970_v45  ;;  %4602 = vsinq.f32 %v755_v29  ;;  %vm2158_vm7 = vcmp.eq.s32.totalorder %v2153_v42, 2  ;;  %v2256_v27 = vand.u32 3, %v5196_v13  ;;  %vm772_vm8 = vcmp.le.f32.partialorder %v771_v26, 0.7853982 }
  0x7d   : > { %4265 = vmatmul.mubr.msk.bf16.gmra.mrb[4].mxu0 %vm989_vm10, %v5189_v41  ;;  %1205 = vmatpush1.bf16.msra.mxu1 %v1016_v47  ;;  %v834_v30 = vshll.u32 %v5198_v39, 30  ;;  %vm766_vm14 = vcmp.eq.s32.totalorder %v761_v36, 2  ;;  %vm763_vm15 = vcmp.eq.s32.totalorder %v761_v36, 0  ;;  %vm762_vm0 = vcmp.lt.s32.totalorder %v761_v36, 2 }
  0x7e   : > { %1183 = vmatprep.mubr.bf16.mxu0 %v4708_v0  ;;  %v2160_v8 = vsel %vm2158_vm7, %v663_v31, %v5131_v38  ;;  %v857_v24 = vsub.s32 4, %v5198_v39  ;;  %vm2257_vm9 = vcmp.lt.s32.totalorder %v2256_v27, 2  ;;  %vm2258_vm11 = vcmp.eq.s32.totalorder %v2256_v27, 0 }
  0x7f   : > { %4268 = vmatmul.mubr.msk.bf16.gmra.mrb[4].mxu1 %vm989_vm10, %v5189_v41  ;;  %v835_v51 = vsub.s32 %v831_v17, %v834_v30  ;;  %v2161_v62 = vsel %vm2154_vm3, %v2157_v33, %v2160_v8  ;;  %vm2261_vm12 = vcmp.eq.s32.totalorder %v2256_v27, 2  ;;  %v359_v5 = vcombine.high %v4826_v1, %v4826_v1 }
  0x80   : > { %1236 = vmatprep.mubr.bf16.mxu1 %v4708_v0 }
  0x81   : > { %v837_v53 = vsub.s32 0, %v835_v51 }
  0x83   : > { %v4258_v18 = vmin.u32 %v837_v53, %v835_v51 }
  0x85   : > { %4270 = vmatmul.mubr.msk.bf16.vlgmr.msra.gmra.mrb[8].mxu0 %vm989_vm10, %v5146_v63  ;;  %v5211_v55 = vpop.eup %4600  ;;  %v839_v56 = vclz %v4258_v18 }
  0x86   : > { %1193 = vmatprep.mubr.bf16.mxu0 %v4708_v0  ;;  %v5214_v57 = vpop.eup %4602  ;;  %v767_v40 = vxor.u32 2147483648, %v5211_v55 }
  0x87   : > { %4273 = vmatmul.mubr.msk.bf16.vlgmr.msra.gmra.mrb[8].mxu1 %vm989_vm10, %v5146_v63  ;;  %v764_v58 = vxor.u32 2147483648, %v5214_v57  ;;  %v4259_v59 = vadd.s32 4294967294, %v839_v56 }
  0x88   : > { %1246 = vmatprep.mubr.bf16.mxu1 %v4708_v0  ;;  %v768_v60 = vsel %vm766_vm14, %v767_v40, %v5214_v57  ;;  %v2263_v26 = vsel %vm2261_vm12, %v767_v40, %v5214_v57  ;;  %v373_v40 = vrot.slane %v359_v5, %v4934_v22 }
  0x89   : > { %v765_v61 = vsel %vm763_vm15, %v5211_v55, %v764_v58  ;;  %vm4260_vm2 = vcmp.lt.s32.totalorder %v4259_v59, 0  ;;  %v2260_v23 = vsel %vm2258_vm11, %v5211_v55, %v764_v58  ;;  %vm863_vm15 = vweird.f32 %v4925_v12  ;;  %v4643_v55 = vld.sshfl [vmem:[%s4823_s25] sm:$0xff pattern:$0x76325410] }
  0x8a   : > { %v769_v50 = vsel %vm762_vm0, %v765_v61, %v768_v60  ;;  %v842_v6 = vsel %vm4260_vm2, 0, %v4259_v59  ;;  %v2264_v29 = vsel %vm2257_vm9, %v2260_v23, %v2263_v26  ;;  %v4641_v60 = vld [vmem:[%s4823_s25 + $0x8] sm:$0xff]  ;;  %v353_v23 = vld [vmem:[%s5812_s4 + $0x10] sm:$0xff]  ;;  %v5334_v26 = vld [vmem:[%s5809_s1] sm:$0xff]  }
  0x8b   : > { %v770_v4 = vsel %vm759_vm1, nan, %v769_v50  ;;  %v843_v7 = vsub.s32 32, %v842_v6  ;;  %v844_v10 = vshll.u32 %v835_v51, %v842_v6  ;;  %v847_v32 = vsub.s32 4294967266, %v842_v6  ;;  %3037 = vperm.xlu1 %4579, %v353_v23   ;;  %v4589_v23 = vld [vmem:[%s5811_s3 + $0x8] sm:$0xff]  }
  0x8c   : > { %v920_v11 = vrot.slane %v770_v4, %v4934_v22  ;;  %v913_v3 = vcombine.high %v770_v4, %v770_v4  ;;  %v5276_v13 = vsel %vm759_vm1, nan, %v2264_v29  ;;  %v376_v42 = vcombine.high %v4641_v60, %v4641_v60  ;;  %v354_v29 = vld [vmem:[%s5812_s4 + $0x18] sm:$0xff] }
  0x8d   : > { %4271 = vmatmul.mubr.msk.bf16.gmra.mrb[12].mxu0 %vm989_vm10, %v5189_v41  ;;  %v845_v9 = vshrl.u32 %v5159_v44, %v843_v7  ;;  %v848_v14 = vadd.s32 127, %v847_v32  ;;  %v5249_v44 = vsel %vm655_vm6, nan, %v2161_v62  ;;  %vm773_vm6 = vcmp.lt.s32.totalorder %v4925_v12, 0 }
  0x8e   : > { %1289 = vmatprep.mubr.bf16.mxu0 %v4708_v0  ;;  %v928_v15 = vcombine.high %v920_v11, %v920_v11  ;;  %v927_v20 = vrot.slane %v913_v3, %v4934_v22  ;;  %v971_v35 = vpack.c.bf16 %v920_v11, %v920_v11  ;;  %v858_v37 = vsel %vm773_vm6, %v857_v24, %v5198_v39  ;;  %v4642_v24 = vld [vmem:[%s4823_s25 + $0x10] sm:$0xff]  ;;  %s4650_s25 = scalar_lea.vmem %s4649_s24, 2048 }
  0x8f   : > { %4274 = vmatmul.mubr.msk.bf16.gmra.mrb[12].mxu1 %vm989_vm10, %v5189_v41  ;;  %v846_v34 = vor.u32 %v845_v9, %v844_v10  ;;  %v849_v25 = vshll.u32 %v848_v14, 23  ;;  %v860_v47 = vsel %vm772_vm8, 0, %v858_v37  ;;  %v374_v6 = vcombine.high %v4643_v55, %v4643_v55  ;;  %3042 = vperm.xlu1 %4579, %v354_v29   ;;  %p4652_p1 = scmp.lt.s32.totalorder %s4650_s25, %s4644_s13 }
  0x90   : > { %1342 = vmatprep.mubr.bf16.mxu1 %v4708_v0  ;;  %v972_v46 = vpack.c.bf16 %v928_v15, %v928_v15  ;;  %v929_v52 = vcombine.high %v927_v20, %v927_v20  ;;  %v1022_v38 = vsel %vm996_vm5, %v971_v35, 0  ;;  %v973_v31 = vpack.c.bf16 %v927_v20, %v927_v20 }
  0x91   : > { %v850_v19 = vor.u32 4788187, %v849_v25  ;;  %v853_v16 = vcvt.s32.f32 %v846_v34  ;;  %v864_v39 = vadd.s32 3, %v860_v47  ;;  %v2359_v53 = vand.u32 3, %v860_v47  ;;  %v352_v47 = vld [vmem:[%s5812_s4 + $0x8] sm:$0xff]  ;;  %p4653_p2 = por %p4652_p1, %p4651_p0 }
  0x92   : > { %4275 = vmatprep.subr.msk.bf16.mxu0 %vm996_vm5, %v972_v46  ;;  %v974_v54 = vpack.c.bf16 %v929_v52, %v929_v52  ;;  %v1028_v21 = vsel %vm996_vm5, %v973_v31, 0  ;;  %v383_v4 = vrot.slane %v4641_v60, %v4934_v22  ;;  %v375_v11 = vcombine.high %v373_v40, %v373_v40 }
  0x93   : > { %1258 = vmatpush1.bf16.msra.mxu0 %v1022_v38  ;;  %v851_v17 = vand.u32 2147483647, %v850_v19  ;;  %v865_v49 = vand.u32 3, %v864_v39  ;;  %vm2360_vm1 = vcmp.lt.s32.totalorder %v2359_v53, 2  ;;  %vm2361_vm2 = vcmp.eq.s32.totalorder %v2359_v53, 0  ;;  %p4654_p3 = pnand %p4653_p2, %p4647_p13 }
  0x94   : > { %4278 = vmatprep.subr.msk.bf16.mxu1 %vm996_vm5, %v974_v54  ;;  %vm2364_vm3 = vcmp.eq.s32.totalorder %v2359_v53, 2  ;;  %v390_v14 = vrot.slane %v376_v42, %v4934_v22  ;;  %v444_v8 = vpack.c.bf16 %v374_v6, %v374_v6  ;;  %v443_v15 = vpack.c.bf16 %v4643_v55, %v4643_v55  ;;  %v5360_v53 = vld [vmem:[%s5809_s1 + $0x8] sm:$0xff]   ;;  %v3179_v55 = vld [vmem:[%s5814_s6 + $0x10] sm:$0xff] }
  0x95   : > { %1311 = vmatpush1.bf16.msra.mxu1 %v1028_v21  ;;  %v854_v2 = vmul.f32 %v853_v16, %v851_v17  ;;  %vm870_vm13 = vcmp.eq.s32.totalorder %v865_v49, 2  ;;  %vm867_vm14 = vcmp.eq.s32.totalorder %v865_v49, 0  ;;  %vm866_vm0 = vcmp.lt.s32.totalorder %v865_v49, 2 }
  0x96   : > { %4276 = vmatmul.mubr.msk.bf16.vlgmr.msra.gmra.mrb[16].mxu0 %vm989_vm10, %v5146_v63  ;;  %v391_v20 = vcombine.high %v383_v4, %v383_v4  ;;  %v445_v46 = vpack.c.bf16 %v373_v40, %v373_v40  ;;  %v446_v31 = vpack.c.bf16 %v375_v11, %v375_v11  ;;  %v392_v19 = vcombine.high %v390_v14, %v390_v14 }
  0x97   : > { %v855_v28 = vxor.u32 2147483648, %v854_v2  ;;  %1299 = vmatprep.mubr.bf16.mxu0 %v4708_v0  ;;  %v1486_v16 = vsel %vm996_vm5, %v443_v15, 0  ;;  %v400_v27 = vrot.slane %v4642_v24, %v4934_v22 }
  0x98   : > { %4279 = vmatmul.mubr.msk.bf16.vlgmr.msra.gmra.mrb[16].mxu1 %vm989_vm10, %v5146_v63  ;;  %v448_v54 = vpack.c.bf16 %v391_v20, %v391_v20  ;;  %v1492_v21 = vsel %vm996_vm5, %v445_v46, 0  ;;  %v450_v17 = vpack.c.bf16 %v392_v19, %v392_v19  ;;  %v2390_v20 = vcombine.high %v5249_v44, %v5249_v44 }
  0x99   : > { %v856_v48 = vsel %vm773_vm6, %v855_v28, %v854_v2  ;;  %1352 = vmatprep.mubr.bf16.mxu1 %v4708_v0  ;;  %v393_v2 = vcombine.high %v4642_v24, %v4642_v24  ;;  %v408_v37 = vcombine.high %v400_v27, %v400_v27 }
  0x9a   : > { %v859_v45 = vsel %vm772_vm8, %v4925_v12, %v856_v48  ;;  %v351_v48 = vld [vmem:[%s5812_s4] sm:$0xff] }
  0x9b   : > { %4604 = vcosq.f32 %v859_v45  ;;  %v407_v28 = vrot.slane %v393_v2, %v4934_v22  ;;  %3027 = vperm.xlu0 %4578, %v351_v48   ;;  %v452_v49 = vpack.c.bf16 %v408_v37, %v408_v37  ;;  %v4588_v2 = vld [vmem:[%s5811_s3] sm:$0xff]  }
  0x9c   : > { %4606 = vsinq.f32 %v859_v45  ;;  %v449_v45 = vpack.c.bf16 %v390_v14, %v390_v14 }
  0x9e   : > { %4277 = vmatmul.mubr.msk.bf16.gmra.mrb[20].mxu0 %vm989_vm10, %v5189_v41 }
  0x9f   : > { %1395 = vmatprep.mubr.bf16.mxu0 %v4708_v0  ;;  %3032 = vperm.xlu0 %4578, %v352_v47  }
  0xa0   : > { %4280 = vmatmul.mubr.msk.bf16.gmra.mrb[20].mxu1 %vm989_vm10, %v5189_v41 }
  0xa1   : > { %1448 = vmatprep.mubr.bf16.mxu1 %v4708_v0 }
  0xa5   : > { %v4605_v30 = vpop.eup %4604 }
  0xa6   : > { %v4607_v51 = vpop.eup %4606  ;;  %v871_v36 = vxor.u32 2147483648, %v4605_v30 }
  0xa7   : > { %v868_v18 = vxor.u32 2147483648, %v4607_v51 }
  0xa8   : > { %v872_v56 = vsel %vm870_vm13, %v871_v36, %v4607_v51  ;;  %v2366_v59 = vsel %vm2364_vm3, %v871_v36, %v4607_v51  ;;  %v3177_v51 = vld [vmem:[%s5814_s6] sm:$0xff]  ;;  %v3178_v36 = vld [vmem:[%s5814_s6 + $0x8] sm:$0xff] }
  0xa9   : > { %v869_v57 = vsel %vm867_vm14, %v4605_v30, %v868_v18  ;;  %v2363_v58 = vsel %vm2361_vm2, %v4605_v30, %v868_v18  ;;  %v1504_v30 = vsel %vm996_vm5, %v449_v45, 0  ;;  %v410_v18 = vcombine.high %v4925_v12, %v4925_v12  ;;  %3215 = vperm.xlu0 %4578, %v3177_v51   ;;  %3220 = vperm.xlu1 %4579, %v3178_v36  }
  0xaa   : > { %v873_v1 = vsel %vm866_vm0, %v869_v57, %v872_v56  ;;  %v2367_v61 = vsel %vm2360_vm1, %v2363_v58, %v2366_v59  ;;  %v417_v56 = vrot.slane %v4925_v12, %v4934_v22  ;;  %v3180_v57 = vld [vmem:[%s5814_s6 + $0x18] sm:$0xff]  ;;  %v3739_v58 = vld [vmem:[%s5816_s8] sm:$0x7]  ;;  %v451_v12 = vpack.c.bf16 %v400_v27, %v400_v27 }
  0xab   : > { %v874_v50 = vsel %vm863_vm15, nan, %v873_v1  ;;  %v5295_v7 = vsel %vm863_vm15, nan, %v2367_v61  ;;  %v424_v40 = vrot.slane %v410_v18, %v4934_v22  ;;  %v453_v1 = vpack.c.bf16 %v407_v28, %v407_v28 }
  0xac   : > { %v937_v10 = vrot.slane %v874_v50, %v4934_v22  ;;  %v930_v32 = vcombine.high %v874_v50, %v874_v50  ;;  %v425_v59 = vcombine.high %v417_v56, %v417_v56  ;;  %v1510_v42 = vsel %vm996_vm5, %v451_v12, 0 }
  0xad   : > { %3225 = vperm.xlu0 %4578, %v3179_v55   ;;  %3230 = vperm.xlu1 %4579, %v3180_v57   ;;  %v426_v60 = vcombine.high %v424_v40, %v424_v40  ;;  %v1516_v50 = vsel %vm996_vm5, %v453_v1, 0  ;;  %v455_v11 = vpack.c.bf16 %v417_v56, %v417_v56  ;;  %v2431_v45 = vrot.slane %v5295_v7, %v4934_v22 }
  0xae   : > { %v945_v3 = vcombine.high %v937_v10, %v937_v10  ;;  %v944_v33 = vrot.slane %v930_v32, %v4934_v22  ;;  %v975_v9 = vpack.c.bf16 %v937_v10, %v937_v10  ;;  %v456_v61 = vpack.c.bf16 %v425_v59, %v425_v59 }
  0xaf   : > { %v458_v6 = vpack.c.bf16 %v426_v60, %v426_v60  ;;  %v2380_v10 = vrot.slane %v5118_v43, %v4934_v22  ;;  %v1522_v14 = vsel %vm996_vm5, %v455_v11, 0  ;;  %v2439_v29 = vcombine.high %v2431_v45, %v2431_v45 }
  0xb0   : > { %v976_v35 = vpack.c.bf16 %v945_v3, %v945_v3  ;;  %v946_v62 = vcombine.high %v944_v33, %v944_v33  ;;  %v1034_v34 = vsel %vm996_vm5, %v975_v9, 0  ;;  %v977_v25 = vpack.c.bf16 %v944_v33, %v944_v33 }
  0xb1   : > { %3774 = vperm.xlu0 %4578, %v3739_v58   ;;  %v2388_v3 = vcombine.high %v2380_v10, %v2380_v10  ;;  %v457_v33 = vpack.c.bf16 %v424_v40, %v424_v40 }
  0xb2   : > { %4281 = vmatprep.subr.msk.bf16.mxu0 %vm996_vm5, %v976_v35  ;;  %v978_v52 = vpack.c.bf16 %v946_v62, %v946_v62  ;;  %v1040_v38 = vsel %vm996_vm5, %v977_v25, 0  ;;  %v2397_v35 = vrot.slane %v5249_v44, %v4934_v22  ;;  %v2404_v62 = vrot.slane %v2390_v20, %v4934_v22 }
  0xb3   : > { %1364 = vmatpush1.bf16.msra.mxu0 %v1034_v34  ;;  %v2457_v34 = vpack.c.bf16 %v2380_v10, %v2380_v10 }
  0xb4   : > { %4284 = vmatprep.subr.msk.bf16.mxu1 %vm996_vm5, %v978_v52  ;;  %4289 = vmatprep.subr.msk.bf16.mxu0 %vm996_vm5, %v444_v8  ;;  %v2458_v8 = vpack.c.bf16 %v2388_v3, %v2388_v3  ;;  %v2405_v25 = vcombine.high %v2397_v35, %v2397_v35  ;;  %v2406_v52 = vcombine.high %v2404_v62, %v2404_v62 }
  0xb5   : > { %1417 = vmatpush1.bf16.msra.mxu1 %v1040_v38  ;;  %v2490_v38 = vsel %vm996_vm5, %v2457_v34, 0  ;;  %v2463_v27 = vpack.c.bf16 %v2404_v62, %v2404_v62 }
  0xb6   : > { %4282 = vmatmul.mubr.msk.bf16.vlgmr.msra.gmra.mrb[24].mxu0 %vm989_vm10, %v5146_v63  ;;  %4292 = vmatprep.subr.msk.bf16.mxu1 %vm996_vm5, %v446_v31  ;;  %v2462_v31 = vpack.c.bf16 %v2405_v25, %v2405_v25  ;;  %v2464_v19 = vpack.c.bf16 %v2406_v52, %v2406_v52 }
  0xb7   : > { %1405 = vmatprep.mubr.bf16.mxu0 %v4708_v0  ;;  %1534 = vmatpush1.bf16.msra.mxu0 %v1486_v16  ;;  %v2407_v16 = vcombine.high %v5276_v13, %v5276_v13  ;;  %v2508_v37 = vsel %vm996_vm5, %v2463_v27, 0 }
  0xb8   : > { %4285 = vmatmul.mubr.msk.bf16.vlgmr.msra.gmra.mrb[24].mxu1 %vm989_vm10, %v5146_v63  ;;  %4295 = vmatprep.subr.msk.bf16.mxu0 %vm996_vm5, %v448_v54  ;;  %v447_v63 = vpack.c.bf16 %v383_v4, %v383_v4  ;;  %v2373_v4 = vcombine.high %v5118_v43, %v5118_v43  ;;  %v1528_v43 = vsel %vm996_vm5, %v457_v33, 0  ;;  %v2414_v54 = vrot.slane %v5276_v13, %v4934_v22 }
  0xb9   : > { %1587 = vmatpush1.bf16.msra.mxu1 %v1492_v21  ;;  %1458 = vmatprep.mubr.bf16.mxu1 %v4708_v0  ;;  %v2421_v21 = vrot.slane %v2407_v16, %v4934_v22 }
  0xba   : > { %4298 = vmatprep.subr.msk.bf16.mxu1 %vm996_vm5, %v450_v17  ;;  %v1498_v39 = vsel %vm996_vm5, %v447_v63, 0  ;;  %v2387_v32 = vrot.slane %v2373_v4, %v4934_v22  ;;  %v2461_v17 = vpack.c.bf16 %v2397_v35, %v2397_v35  ;;  %v2422_v24 = vcombine.high %v2414_v54, %v2414_v54 }
  0xbb   : > { %v2423_v13 = vcombine.high %v2421_v21, %v2421_v21  ;;  %v2465_v47 = vpack.c.bf16 %v2414_v54, %v2414_v54 }
  0xbc   : > { %v2389_v9 = vcombine.high %v2387_v32, %v2387_v32  ;;  %v2459_v46 = vpack.c.bf16 %v2387_v32, %v2387_v32  ;;  %v2466_v63 = vpack.c.bf16 %v2422_v24, %v2422_v24 }
  0xbd   : > { %v2468_v48 = vpack.c.bf16 %v2423_v13, %v2423_v13 }
  0xbe   : > { %4283 = vmatmul.mubr.msk.bf16.gmra.mrb[28].mxu0 %vm989_vm10, %v5189_v41  ;;  %v2460_v15 = vpack.c.bf16 %v2389_v9, %v2389_v9  ;;  %v2496_v44 = vsel %vm996_vm5, %v2459_v46, 0 }
  0xbf   : > { %1565 = vmatprep.mubr.bf16.mxu0 %v4708_v0 }
  0xc0   : > { %4286 = vmatmul.mubr.msk.bf16.gmra.mrb[28].mxu1 %vm989_vm10, %v5189_v41  ;;  %v409_v41 = vcombine.high %v407_v28, %v407_v28  ;;  %v2502_v28 = vsel %vm996_vm5, %v2461_v17, 0 }
  0xc1   : > { %1618 = vmatprep.mubr.bf16.mxu1 %v4708_v0 }
  0xc2   : > { %v454_v5 = vpack.c.bf16 %v409_v41, %v409_v41 }
  0xc6   : > { %4290 = vmatmul.mubr.msk.bf16.vlgmr.msra.gmra.mrb[0].mxu0 %vm989_vm10, %v5334_v26 }
  0xc7   : > { %1575 = vmatprep.mubr.bf16.mxu0 %v4708_v0  ;;  %1640 = vmatpush1.bf16.msra.mxu0 %v1498_v39  ;;  %v2467_v39 = vpack.c.bf16 %v2421_v21, %v2421_v21 }
  0xc8   : > { %4293 = vmatmul.mubr.msk.bf16.vlgmr.msra.gmra.mrb[0].mxu1 %vm989_vm10, %v5334_v26  ;;  %4301 = vmatprep.subr.msk.bf16.mxu0 %vm996_vm5, %v452_v49 }
  0xc9   : > { %1693 = vmatpush1.bf16.msra.mxu1 %v1504_v30  ;;  %1628 = vmatprep.mubr.bf16.mxu1 %v4708_v0  ;;  %v2514_v30 = vsel %vm996_vm5, %v2465_v47, 0 }
  0xca   : > { %4304 = vmatprep.subr.msk.bf16.mxu1 %vm996_vm5, %v454_v5  ;;  %v2470_v5 = vpack.c.bf16 %v2439_v29, %v2439_v29 }
  0xce   : > { %4291 = vmatmul.mubr.msk.bf16.gmra.mrb[4].mxu0 %vm989_vm10, %v5360_v53 }
  0xcf   : > { %1671 = vmatprep.mubr.bf16.mxu0 %v4708_v0 }
  0xd0   : > { %4294 = vmatmul.mubr.msk.bf16.gmra.mrb[4].mxu1 %vm989_vm10, %v5360_v53 }
  0xd1   : > { %1724 = vmatprep.mubr.bf16.mxu1 %v4708_v0 }
  0xd6   : > { %4296 = vmatmul.mubr.msk.bf16.vlgmr.msra.gmra.mrb[8].mxu0 %vm989_vm10, %v5334_v26 }
  0xd7   : > { %1681 = vmatprep.mubr.bf16.mxu0 %v4708_v0  ;;  %1746 = vmatpush1.bf16.msra.mxu0 %v1510_v42 }
  0xd8   : > { %4299 = vmatmul.mubr.msk.bf16.vlgmr.msra.gmra.mrb[8].mxu1 %vm989_vm10, %v5334_v26  ;;  %4307 = vmatprep.subr.msk.bf16.mxu0 %vm996_vm5, %v456_v61 }
  0xd9   : > { %1799 = vmatpush1.bf16.msra.mxu1 %v1516_v50  ;;  %1734 = vmatprep.mubr.bf16.mxu1 %v4708_v0 }
  0xda   : > { %4310 = vmatprep.subr.msk.bf16.mxu1 %vm996_vm5, %v458_v6 }
  0xde   : > { %4297 = vmatmul.mubr.msk.bf16.gmra.mrb[12].mxu0 %vm989_vm10, %v5360_v53 }
  0xdf   : > { %1777 = vmatprep.mubr.bf16.mxu0 %v4708_v0 }
  0xe0   : > { %4300 = vmatmul.mubr.msk.bf16.gmra.mrb[12].mxu1 %vm989_vm10, %v5360_v53 }
  0xe1   : > { %1830 = vmatprep.mubr.bf16.mxu1 %v4708_v0 }
  0xe6   : > { %4302 = vmatmul.mubr.msk.bf16.vlgmr.msra.gmra.mrb[16].mxu0 %vm989_vm10, %v5334_v26 }
  0xe7   : > { %1787 = vmatprep.mubr.bf16.mxu0 %v4708_v0  ;;  %1852 = vmatpush1.bf16.msra.mxu0 %v1522_v14 }
  0xe8   : > { %4305 = vmatmul.mubr.msk.bf16.vlgmr.msra.gmra.mrb[16].mxu1 %vm989_vm10, %v5334_v26  ;;  %4331 = vmatprep.subr.msk.bf16.mxu0 %vm996_vm5, %v2458_v8 }
  0xe9   : > { %1905 = vmatpush1.bf16.msra.mxu1 %v1528_v43  ;;  %1840 = vmatprep.mubr.bf16.mxu1 %v4708_v0 }
  0xea   : > { %4334 = vmatprep.subr.msk.bf16.mxu1 %vm996_vm5, %v2460_v15 }
  0xee   : > { %4303 = vmatmul.mubr.msk.bf16.gmra.mrb[20].mxu0 %vm989_vm10, %v5360_v53 }
  0xef   : > { %1883 = vmatprep.mubr.bf16.mxu0 %v4708_v0 }
  0xf0   : > { %4306 = vmatmul.mubr.msk.bf16.gmra.mrb[20].mxu1 %vm989_vm10, %v5360_v53 }
  0xf1   : > { %1936 = vmatprep.mubr.bf16.mxu1 %v4708_v0 }
  0xf6   : > { %4308 = vmatmul.mubr.msk.bf16.vlgmr.msra.gmra.mrb[24].mxu0 %vm989_vm10, %v5334_v26 }
  0xf7   : > { %1893 = vmatprep.mubr.bf16.mxu0 %v4708_v0  ;;  %2538 = vmatpush1.bf16.msra.mxu0 %v2490_v38 }
  0xf8   : > { %4311 = vmatmul.mubr.msk.bf16.vlgmr.msra.gmra.mrb[24].mxu1 %vm989_vm10, %v5334_v26  ;;  %4337 = vmatprep.subr.msk.bf16.mxu0 %vm996_vm5, %v2462_v31  ;;  %v2424_v26 = vcombine.high %v5295_v7, %v5295_v7  ;;  %v2520_v7 = vsel %vm996_vm5, %v2467_v39, 0 }
  0xf9   : > { %2591 = vmatpush1.bf16.msra.mxu1 %v2496_v44  ;;  %1946 = vmatprep.mubr.bf16.mxu1 %v4708_v0 }
  0xfa   : > { %4340 = vmatprep.subr.msk.bf16.mxu1 %vm996_vm5, %v2464_v19  ;;  %v2438_v41 = vrot.slane %v2424_v26, %v4934_v22  ;;  %v2469_v22 = vpack.c.bf16 %v2431_v45, %v2431_v45 }
  0xfc   : > { %v2440_v49 = vcombine.high %v2438_v41, %v2438_v41  ;;  %v2471_v36 = vpack.c.bf16 %v2438_v41, %v2438_v41 }
  0xfe   : > { %4309 = vmatmul.mubr.msk.bf16.gmra.mrb[28].mxu0 %vm989_vm10, %v5360_v53  ;;  %v2472_v51 = vpack.c.bf16 %v2440_v49, %v2440_v49  ;;  %v2532_v18 = vsel %vm996_vm5, %v2471_v36, 0 }
  0xff   : > { %2569 = vmatprep.mubr.bf16.mxu0 %v4708_v0 }
 0x100   : > { %4312 = vmatmul.mubr.msk.bf16.gmra.mrb[28].mxu1 %vm989_vm10, %v5360_v53  ;;  %v2526_v53 = vsel %vm996_vm5, %v2469_v22, 0 }
 0x101   : > { %2622 = vmatprep.mubr.bf16.mxu1 %v4708_v0 }
 0x106   : > { %4332 = vmatmul.mubr.msk.bf16.vlgmr.msra.gmra.mrb[0].mxu0 %vm989_vm10, %v4588_v2 }
 0x107   : > { %2579 = vmatprep.mubr.bf16.mxu0 %v4708_v0  ;;  %2644 = vmatpush1.bf16.msra.mxu0 %v2502_v28 }
 0x108   : > { %4335 = vmatmul.mubr.msk.bf16.vlgmr.msra.gmra.mrb[0].mxu1 %vm989_vm10, %v4588_v2  ;;  %4343 = vmatprep.subr.msk.bf16.mxu0 %vm996_vm5, %v2466_v63 }
 0x109   : > { %2697 = vmatpush1.bf16.msra.mxu1 %v2508_v37  ;;  %2632 = vmatprep.mubr.bf16.mxu1 %v4708_v0 }
 0x10a   : > { %4346 = vmatprep.subr.msk.bf16.mxu1 %vm996_vm5, %v2468_v48  ;;  %v5501_v56 = vpop.permute.xlu1 %3037 }
 0x10e   : > { %4333 = vmatmul.mubr.msk.bf16.gmra.mrb[4].mxu0 %vm989_vm10, %v4589_v23  ;;  %v5513_v52 = vpop.permute.xlu1 %3042 }
 0x10f   : > { %2675 = vmatprep.mubr.bf16.mxu0 %v4708_v0 }
 0x110   : > { %4336 = vmatmul.mubr.msk.bf16.gmra.mrb[4].mxu1 %vm989_vm10, %v4589_v23 }
 0x111   : > { %2728 = vmatprep.mubr.bf16.mxu1 %v4708_v0 }
 0x116   : > { %4338 = vmatmul.mubr.msk.bf16.vlgmr.msra.gmra.mrb[8].mxu0 %vm989_vm10, %v4588_v2 }
 0x117   : > { %2685 = vmatprep.mubr.bf16.mxu0 %v4708_v0  ;;  %2750 = vmatpush1.bf16.msra.mxu0 %v2514_v30 }
 0x118   : > { %4341 = vmatmul.mubr.msk.bf16.vlgmr.msra.gmra.mrb[8].mxu1 %vm989_vm10, %v4588_v2  ;;  %4349 = vmatprep.subr.msk.bf16.mxu0 %vm996_vm5, %v2470_v5 }
 0x119   : > { %2803 = vmatpush1.bf16.msra.mxu1 %v2520_v7  ;;  %2738 = vmatprep.mubr.bf16.mxu1 %v4708_v0 }
 0x11a   : > { %4352 = vmatprep.subr.msk.bf16.mxu1 %vm996_vm5, %v2472_v51  ;;  %v5499_v55 = vpop.permute.xlu0 %3027  ;;  %vm3243_vm5 = vcmask 261120  }
 0x11e   : > { %4339 = vmatmul.mubr.msk.bf16.gmra.mrb[12].mxu0 %vm989_vm10, %v4589_v23  ;;  %v5503_v40 = vpop.permute.xlu0 %3032 }
 0x11f   : > { %2781 = vmatprep.mubr.bf16.mxu0 %v4708_v0 }
 0x120   : > { %4342 = vmatmul.mubr.msk.bf16.gmra.mrb[12].mxu1 %vm989_vm10, %v4589_v23 }
 0x121   : > { %2834 = vmatprep.mubr.bf16.mxu1 %v4708_v0 }
 0x126   : > { %4344 = vmatmul.mubr.msk.bf16.vlgmr.msra.gmra.mrb[16].mxu0 %vm989_vm10, %v4588_v2 }
 0x127   : > { %2791 = vmatprep.mubr.bf16.mxu0 %v4708_v0  ;;  %2856 = vmatpush1.bf16.msra.mxu0 %v2526_v53 }
 0x128   : > { %4347 = vmatmul.mubr.msk.bf16.vlgmr.msra.gmra.mrb[16].mxu1 %vm989_vm10, %v4588_v2 }
 0x129   : > { %2909 = vmatpush1.bf16.msra.mxu1 %v2532_v18  ;;  %2844 = vmatprep.mubr.bf16.mxu1 %v4708_v0 }
 0x12e   : > { %4345 = vmatmul.mubr.msk.bf16.gmra.mrb[20].mxu0 %vm989_vm10, %v4589_v23 }
 0x12f   : > { %2887 = vmatprep.mubr.bf16.mxu0 %v4708_v0 }
 0x130   : > { %4348 = vmatmul.mubr.msk.bf16.gmra.mrb[20].mxu1 %vm989_vm10, %v4589_v23 }
 0x131   : > { %2940 = vmatprep.mubr.bf16.mxu1 %v4708_v0 }
 0x136   : > { %4350 = vmatmul.mubr.msk.bf16.vlgmr.msra.gmra.mrb[24].mxu0 %vm989_vm10, %v4588_v2 }
 0x137   : > { %2897 = vmatprep.mubr.bf16.mxu0 %v4708_v0 }
 0x138   : > { %4353 = vmatmul.mubr.msk.bf16.vlgmr.msra.gmra.mrb[24].mxu1 %vm989_vm10, %v4588_v2 }
 0x139   : > { %2950 = vmatprep.mubr.bf16.mxu1 %v4708_v0 }
 0x13e   : > { %4351 = vmatmul.mubr.msk.bf16.gmra.mrb[28].mxu0 %vm989_vm10, %v4589_v23 }
 0x13f   : > { %3282 = vmatprep.mubr.bf16.mxu0 %v4708_v0 }
 0x140   : > { %4354 = vmatmul.mubr.msk.bf16.gmra.mrb[28].mxu1 %vm989_vm10, %v4589_v23 }
 0x141   : > { %3335 = vmatprep.mubr.bf16.mxu1 %v4708_v0 }
 0x1d9   : > { %v2571_v57 = vpop.f32.mrb[0].mxu0 }
 0x1da   : > { %v3045_v58 = vadd.f32 %v5499_v55, %v2571_v57  ;;  %v2573_v12 = vpop.f32.mrb[1].mxu0 }
 0x1db   : > { %v3046_v59 = vadd.f32 %v5499_v55, %v2573_v12  ;;  %v2575_v1 = vpop.f32.mrb[2].mxu0  ;;  %v2624_v60 = vpop.f32.mrb[0].mxu1 }
 0x1dc   : > { %v3061_v42 = vadd.f32 %v5503_v40, %v2575_v1  ;;  %v3047_v61 = vadd.f32 %v5499_v55, %v2624_v60  ;;  %v2577_v50 = vpop.f32.mrb[3].mxu0  ;;  %v2626_v6 = vpop.f32.mrb[1].mxu1  ;;  %v3109_v11 = vmax.f32 %v3045_v58, 0.0 }
 0x1dd   : > { %v3062_v4 = vadd.f32 %v5503_v40, %v2577_v50  ;;  %v3048_v10 = vadd.f32 %v5499_v55, %v2626_v6  ;;  %v2628_v32 = vpop.f32.mrb[2].mxu1  ;;  %v3110_v14 = vmax.f32 %v3046_v59, 0.0  ;;  %v5528_v59 = vld [vmem:[%s5813_s5] sm:$0xff]  }
 0x1de   : > { %v3125_v3 = vmax.f32 %v3061_v42, 0.0  ;;  %v3063_v33 = vadd.f32 %v5503_v40, %v2628_v32  ;;  %v2630_v9 = vpop.f32.mrb[3].mxu1  ;;  %v3111_v20 = vmax.f32 %v3047_v61, 0.0 }
 0x1df   : > { %v3126_v8 = vmax.f32 %v3062_v4, 0.0  ;;  %v3064_v43 = vadd.f32 %v5503_v40, %v2630_v9  ;;  %v3112_v34 = vmax.f32 %v3048_v10, 0.0 }
 0x1e0   : > { %v3181_v15 = vpack.c.bf16 %v3125_v3, %v3109_v11  ;;  %v3127_v35 = vmax.f32 %v3063_v33, 0.0 }
 0x1e1   : > { %v3182_v62 = vpack.c.bf16 %v3126_v8, %v3110_v14  ;;  %v3128_v25 = vmax.f32 %v3064_v43, 0.0  ;;  %v2581_v46 = vpop.f32.mrb[4].mxu0 }
 0x1e2   : > { %v3183_v38 = vpack.c.bf16 %v3127_v35, %v3111_v20  ;;  %v3077_v31 = vadd.f32 %v5501_v56, %v2581_v46  ;;  %v2583_v44 = vpop.f32.mrb[5].mxu0 }
 0x1e3   : > { %v3184_v19 = vpack.c.bf16 %v3128_v25, %v3112_v34  ;;  %v3078_v16 = vadd.f32 %v5501_v56, %v2583_v44  ;;  %v2585_v54 = vpop.f32.mrb[6].mxu0  ;;  %v2634_v21 = vpop.f32.mrb[4].mxu1  ;;  %3250 = vmatprep.subr.bf16.mxu0 %v3182_v62 }
 0x1e4   : > { %v3093_v17 = vadd.f32 %v5513_v52, %v2585_v54  ;;  %v3079_v24 = vadd.f32 %v5501_v56, %v2634_v21  ;;  %v2587_v2 = vpop.f32.mrb[7].mxu0  ;;  %v2636_v27 = vpop.f32.mrb[5].mxu1  ;;  %3251 = vmatpush1.bf16.msra.mxu0 %v3181_v15  ;;  %v3141_v37 = vmax.f32 %v3077_v31, 0.0  ;;  %v5547_v54 = vld [vmem:[%s5813_s5 + $0x8] sm:$0xff]  }
 0x1e5   : > { %v3094_v13 = vadd.f32 %v5513_v52, %v2587_v2  ;;  %v3080_v28 = vadd.f32 %v5501_v56, %v2636_v27  ;;  %v2638_v63 = vpop.f32.mrb[6].mxu1  ;;  %3303 = vmatprep.subr.bf16.mxu1 %v3184_v19  ;;  %v3142_v45 = vmax.f32 %v3078_v16, 0.0 }
 0x1e6   : > { %v3157_v48 = vmax.f32 %v3093_v17, 0.0  ;;  %v3095_v23 = vadd.f32 %v5513_v52, %v2638_v63  ;;  %v2640_v26 = vpop.f32.mrb[7].mxu1  ;;  %3304 = vmatpush1.bf16.msra.mxu1 %v3183_v38  ;;  %v3143_v39 = vmax.f32 %v3079_v24, 0.0 }
 0x1e7   : > { %v3158_v41 = vmax.f32 %v3094_v13, 0.0  ;;  %v3096_v47 = vadd.f32 %v5513_v52, %v2640_v26  ;;  %v3144_v5 = vmax.f32 %v3080_v28, 0.0 }
 0x1e8   : > { %v3197_v29 = vpack.c.bf16 %v3157_v48, %v3141_v37  ;;  %v3159_v49 = vmax.f32 %v3095_v23, 0.0 }
 0x1e9   : > { %v3198_v30 = vpack.c.bf16 %v3158_v41, %v3142_v45  ;;  %v3160_v7 = vmax.f32 %v3096_v47, 0.0  ;;  %v2677_v51 = vpop.f32.mrb[8].mxu0 }
 0x1ea   : > { %v3199_v22 = vpack.c.bf16 %v3159_v49, %v3143_v39  ;;  %v3049_v36 = vadd.f32 %v5499_v55, %v2677_v51  ;;  %v2679_v53 = vpop.f32.mrb[9].mxu0 }
 0x1eb   : > { %v3200_v18 = vpack.c.bf16 %v3160_v7, %v3144_v5  ;;  %v3050_v57 = vadd.f32 %v5499_v55, %v2679_v53  ;;  %v2681_v58 = vpop.f32.mrb[10].mxu0  ;;  %v2730_v12 = vpop.f32.mrb[8].mxu1  ;;  %3252 = vmatprep.subr.bf16.mxu0 %v3198_v30 }
 0x1ec   : > { %v3065_v1 = vadd.f32 %v5503_v40, %v2681_v58  ;;  %v3051_v60 = vadd.f32 %v5499_v55, %v2730_v12  ;;  %v2683_v42 = vpop.f32.mrb[11].mxu0  ;;  %v2732_v61 = vpop.f32.mrb[9].mxu1  ;;  %3253 = vmatpush1.bf16.msra.mxu0 %v3197_v29  ;;  %v3113_v10 = vmax.f32 %v3049_v36, 0.0 }
 0x1ed   : > { %v3066_v50 = vadd.f32 %v5503_v40, %v2683_v42  ;;  %v3052_v6 = vadd.f32 %v5499_v55, %v2732_v61  ;;  %v2734_v4 = vpop.f32.mrb[10].mxu1  ;;  %3305 = vmatprep.subr.bf16.mxu1 %v3200_v18  ;;  %v3114_v33 = vmax.f32 %v3050_v57, 0.0 }
 0x1ee   : > { %v3129_v32 = vmax.f32 %v3065_v1, 0.0  ;;  %v3067_v11 = vadd.f32 %v5503_v40, %v2734_v4  ;;  %v2736_v3 = vpop.f32.mrb[11].mxu1  ;;  %3306 = vmatpush1.bf16.msra.mxu1 %v3199_v22  ;;  %v3115_v43 = vmax.f32 %v3051_v60, 0.0 }
 0x1ef   : > { %v3130_v9 = vmax.f32 %v3066_v50, 0.0  ;;  %v3068_v14 = vadd.f32 %v5503_v40, %v2736_v3  ;;  %4357 = vmatmul.mubr.msk.bf16.vlgmr.msra.gmra.mrb[32].mxu0 %vm3243_vm5, %v5528_v59  ;;  %v3116_v35 = vmax.f32 %v3052_v6, 0.0 }
 0x1f0   : > { %v3185_v8 = vpack.c.bf16 %v3129_v32, %v3113_v10  ;;  %v3131_v15 = vmax.f32 %v3067_v11, 0.0  ;;  %3292 = vmatprep.mubr.bf16.mxu0 %v4708_v0 }
 0x1f1   : > { %v3186_v20 = vpack.c.bf16 %v3130_v9, %v3114_v33  ;;  %v3132_v62 = vmax.f32 %v3068_v14, 0.0  ;;  %v2687_v34 = vpop.f32.mrb[12].mxu0  ;;  %4359 = vmatmul.mubr.msk.bf16.vlgmr.msra.gmra.mrb[32].mxu1 %vm3243_vm5, %v5528_v59 }
 0x1f2   : > { %v3187_v25 = vpack.c.bf16 %v3131_v15, %v3115_v43  ;;  %v3081_v46 = vadd.f32 %v5501_v56, %v2687_v34  ;;  %v2689_v38 = vpop.f32.mrb[13].mxu0  ;;  %3345 = vmatprep.mubr.bf16.mxu1 %v4708_v0 }
 0x1f3   : > { %v3188_v31 = vpack.c.bf16 %v3132_v62, %v3116_v35  ;;  %v3082_v44 = vadd.f32 %v5501_v56, %v2689_v38  ;;  %v2691_v19 = vpop.f32.mrb[14].mxu0  ;;  %v2740_v16 = vpop.f32.mrb[12].mxu1  ;;  %3356 = vmatprep.subr.bf16.mxu0 %v3186_v20 }
 0x1f4   : > { %v3097_v21 = vadd.f32 %v5513_v52, %v2691_v19  ;;  %v3083_v17 = vadd.f32 %v5501_v56, %v2740_v16  ;;  %v2693_v24 = vpop.f32.mrb[15].mxu0  ;;  %v2742_v2 = vpop.f32.mrb[13].mxu1  ;;  %3357 = vmatpush1.bf16.msra.mxu0 %v3185_v8  ;;  %v3145_v63 = vmax.f32 %v3081_v46, 0.0 }
 0x1f5   : > { %v3098_v27 = vadd.f32 %v5513_v52, %v2693_v24  ;;  %v3084_v13 = vadd.f32 %v5501_v56, %v2742_v2  ;;  %v2744_v28 = vpop.f32.mrb[14].mxu1  ;;  %3409 = vmatprep.subr.bf16.mxu1 %v3188_v31  ;;  %v3146_v26 = vmax.f32 %v3082_v44, 0.0 }
 0x1f6   : > { %v3161_v37 = vmax.f32 %v3097_v21, 0.0  ;;  %v3099_v48 = vadd.f32 %v5513_v52, %v2744_v28  ;;  %v2746_v23 = vpop.f32.mrb[15].mxu1  ;;  %3410 = vmatpush1.bf16.msra.mxu1 %v3187_v25  ;;  %v3147_v29 = vmax.f32 %v3083_v17, 0.0 }
 0x1f7   : > { %v3162_v45 = vmax.f32 %v3098_v27, 0.0  ;;  %v3100_v41 = vadd.f32 %v5513_v52, %v2746_v23  ;;  %4358 = vmatmul.mubr.msk.bf16.gmra.mrb[36].mxu0 %vm3243_vm5, %v5547_v54  ;;  %v3148_v30 = vmax.f32 %v3084_v13, 0.0 }
 0x1f8   : > { %v3201_v47 = vpack.c.bf16 %v3161_v37, %v3145_v63  ;;  %v3163_v39 = vmax.f32 %v3099_v48, 0.0  ;;  %3388 = vmatprep.mubr.bf16.mxu0 %v4708_v0 }
 0x1f9   : > { %v3202_v49 = vpack.c.bf16 %v3162_v45, %v3146_v26  ;;  %v3164_v5 = vmax.f32 %v3100_v41, 0.0  ;;  %v2783_v7 = vpop.f32.mrb[16].mxu0  ;;  %4360 = vmatmul.mubr.msk.bf16.gmra.mrb[36].mxu1 %vm3243_vm5, %v5547_v54 }
 0x1fa   : > { %v3203_v51 = vpack.c.bf16 %v3163_v39, %v3147_v29  ;;  %v3053_v22 = vadd.f32 %v5499_v55, %v2783_v7  ;;  %v2785_v36 = vpop.f32.mrb[17].mxu0  ;;  %3441 = vmatprep.mubr.bf16.mxu1 %v4708_v0 }
 0x1fb   : > { %v3204_v53 = vpack.c.bf16 %v3164_v5, %v3148_v30  ;;  %v3054_v18 = vadd.f32 %v5499_v55, %v2785_v36  ;;  %v2787_v57 = vpop.f32.mrb[18].mxu0  ;;  %v2836_v58 = vpop.f32.mrb[16].mxu1  ;;  %3358 = vmatprep.subr.bf16.mxu0 %v3202_v49 }
 0x1fc   : > { %v3069_v12 = vadd.f32 %v5503_v40, %v2787_v57  ;;  %v3055_v1 = vadd.f32 %v5499_v55, %v2836_v58  ;;  %v2789_v60 = vpop.f32.mrb[19].mxu0  ;;  %v2838_v42 = vpop.f32.mrb[17].mxu1  ;;  %3359 = vmatpush1.bf16.msra.mxu0 %v3201_v47  ;;  %v3117_v4 = vmax.f32 %v3053_v22, 0.0 }
 0x1fd   : > { %v3070_v61 = vadd.f32 %v5503_v40, %v2789_v60  ;;  %v3056_v50 = vadd.f32 %v5499_v55, %v2838_v42  ;;  %v2840_v6 = vpop.f32.mrb[18].mxu1  ;;  %3411 = vmatprep.subr.bf16.mxu1 %v3204_v53  ;;  %v3118_v3 = vmax.f32 %v3054_v18, 0.0 }
 0x1fe   : > { %v3133_v10 = vmax.f32 %v3069_v12, 0.0  ;;  %v3071_v32 = vadd.f32 %v5503_v40, %v2840_v6  ;;  %v2842_v11 = vpop.f32.mrb[19].mxu1  ;;  %3412 = vmatpush1.bf16.msra.mxu1 %v3203_v51  ;;  %v3119_v8 = vmax.f32 %v3055_v1, 0.0 }
 0x1ff   : > { %v3134_v33 = vmax.f32 %v3070_v61, 0.0  ;;  %v3072_v9 = vadd.f32 %v5503_v40, %v2842_v11  ;;  %4361 = vmatmul.mubr.msk.bf16.vlgmr.msra.gmra.mrb[40].mxu0 %vm3243_vm5, %v5528_v59  ;;  %v3120_v20 = vmax.f32 %v3056_v50, 0.0 }
 0x200   : > { %v3189_v14 = vpack.c.bf16 %v3133_v10, %v3117_v4  ;;  %v3135_v43 = vmax.f32 %v3071_v32, 0.0  ;;  %3398 = vmatprep.mubr.bf16.mxu0 %v4708_v0 }
 0x201   : > { %v3190_v15 = vpack.c.bf16 %v3134_v33, %v3118_v3  ;;  %v3136_v35 = vmax.f32 %v3072_v9, 0.0  ;;  %v2793_v62 = vpop.f32.mrb[20].mxu0  ;;  %4363 = vmatmul.mubr.msk.bf16.vlgmr.msra.gmra.mrb[40].mxu1 %vm3243_vm5, %v5528_v59 }
 0x202   : > { %v3191_v34 = vpack.c.bf16 %v3135_v43, %v3119_v8  ;;  %v3085_v25 = vadd.f32 %v5501_v56, %v2793_v62  ;;  %v2795_v46 = vpop.f32.mrb[21].mxu0  ;;  %3451 = vmatprep.mubr.bf16.mxu1 %v4708_v0 }
 0x203   : > { %v3192_v38 = vpack.c.bf16 %v3136_v35, %v3120_v20  ;;  %v3086_v31 = vadd.f32 %v5501_v56, %v2795_v46  ;;  %v2797_v44 = vpop.f32.mrb[22].mxu0  ;;  %v2846_v19 = vpop.f32.mrb[20].mxu1  ;;  %3462 = vmatprep.subr.bf16.mxu0 %v3190_v15 }
 0x204   : > { %v3101_v16 = vadd.f32 %v5513_v52, %v2797_v44  ;;  %v3087_v21 = vadd.f32 %v5501_v56, %v2846_v19  ;;  %v2799_v17 = vpop.f32.mrb[23].mxu0  ;;  %v2848_v24 = vpop.f32.mrb[21].mxu1  ;;  %3463 = vmatpush1.bf16.msra.mxu0 %v3189_v14  ;;  %v3149_v28 = vmax.f32 %v3085_v25, 0.0 }
 0x205   : > { %v3102_v2 = vadd.f32 %v5513_v52, %v2799_v17  ;;  %v3088_v27 = vadd.f32 %v5501_v56, %v2848_v24  ;;  %v2850_v13 = vpop.f32.mrb[22].mxu1  ;;  %3515 = vmatprep.subr.bf16.mxu1 %v3192_v38  ;;  %v3150_v23 = vmax.f32 %v3086_v31, 0.0 }
 0x206   : > { %v3165_v63 = vmax.f32 %v3101_v16, 0.0  ;;  %v3103_v37 = vadd.f32 %v5513_v52, %v2850_v13  ;;  %v2852_v48 = vpop.f32.mrb[23].mxu1  ;;  %3516 = vmatpush1.bf16.msra.mxu1 %v3191_v34  ;;  %v3151_v47 = vmax.f32 %v3087_v21, 0.0 }
 0x207   : > { %v3166_v26 = vmax.f32 %v3102_v2, 0.0  ;;  %v3104_v45 = vadd.f32 %v5513_v52, %v2852_v48  ;;  %4362 = vmatmul.mubr.msk.bf16.gmra.mrb[44].mxu0 %vm3243_vm5, %v5547_v54  ;;  %v3152_v49 = vmax.f32 %v3088_v27, 0.0 }
 0x208   : > { %v3205_v41 = vpack.c.bf16 %v3165_v63, %v3149_v28  ;;  %v3167_v29 = vmax.f32 %v3103_v37, 0.0  ;;  %3494 = vmatprep.mubr.bf16.mxu0 %v4708_v0 }
 0x209   : > { %v3206_v39 = vpack.c.bf16 %v3166_v26, %v3150_v23  ;;  %v3168_v30 = vmax.f32 %v3104_v45, 0.0  ;;  %v2889_v5 = vpop.f32.mrb[24].mxu0  ;;  %4364 = vmatmul.mubr.msk.bf16.gmra.mrb[44].mxu1 %vm3243_vm5, %v5547_v54 }
 0x20a   : > { %v3207_v7 = vpack.c.bf16 %v3167_v29, %v3151_v47  ;;  %v3057_v51 = vadd.f32 %v5499_v55, %v2889_v5  ;;  %v2891_v22 = vpop.f32.mrb[25].mxu0  ;;  %3547 = vmatprep.mubr.bf16.mxu1 %v4708_v0 }
 0x20b   : > { %v3208_v36 = vpack.c.bf16 %v3168_v30, %v3152_v49  ;;  %v3058_v53 = vadd.f32 %v5499_v55, %v2891_v22  ;;  %v2893_v18 = vpop.f32.mrb[26].mxu0  ;;  %v2942_v57 = vpop.f32.mrb[24].mxu1  ;;  %3464 = vmatprep.subr.bf16.mxu0 %v3206_v39 }
 0x20c   : > { %v3073_v58 = vadd.f32 %v5503_v40, %v2893_v18  ;;  %v3059_v12 = vadd.f32 %v5499_v55, %v2942_v57  ;;  %v2895_v1 = vpop.f32.mrb[27].mxu0  ;;  %v2944_v60 = vpop.f32.mrb[25].mxu1  ;;  %3465 = vmatpush1.bf16.msra.mxu0 %v3205_v41  ;;  %v3121_v6 = vmax.f32 %v3057_v51, 0.0 }
 0x20d   : > { %v3074_v42 = vadd.f32 %v5503_v40, %v2895_v1  ;;  %v3060_v61 = vadd.f32 %v5499_v55, %v2944_v60  ;;  %v2946_v50 = vpop.f32.mrb[26].mxu1  ;;  %3517 = vmatprep.subr.bf16.mxu1 %v3208_v36  ;;  %v3122_v11 = vmax.f32 %v3058_v53, 0.0  ;;  %v5631_v30 = vpop.permute.xlu1 %3220 }
 0x20e   : > { %v3137_v4 = vmax.f32 %v3073_v58, 0.0  ;;  %v3075_v10 = vadd.f32 %v5503_v40, %v2946_v50  ;;  %v2948_v32 = vpop.f32.mrb[27].mxu1  ;;  %3518 = vmatpush1.bf16.msra.mxu1 %v3207_v7  ;;  %v3123_v14 = vmax.f32 %v3059_v12, 0.0 }
 0x20f   : > { %v3138_v3 = vmax.f32 %v3074_v42, 0.0  ;;  %v3076_v33 = vadd.f32 %v5503_v40, %v2948_v32  ;;  %4365 = vmatmul.mubr.msk.bf16.vlgmr.msra.gmra.mrb[48].mxu0 %vm3243_vm5, %v5528_v59  ;;  %v3124_v43 = vmax.f32 %v3060_v61, 0.0 }
 0x210   : > { %v3193_v9 = vpack.c.bf16 %v3137_v4, %v3121_v6  ;;  %v3139_v8 = vmax.f32 %v3075_v10, 0.0  ;;  %3504 = vmatprep.mubr.bf16.mxu0 %v4708_v0 }
 0x211   : > { %v3194_v55 = vpack.c.bf16 %v3138_v3, %v3122_v11  ;;  %v3140_v15 = vmax.f32 %v3076_v33, 0.0  ;;  %v2899_v20 = vpop.f32.mrb[28].mxu0  ;;  %4367 = vmatmul.mubr.msk.bf16.vlgmr.msra.gmra.mrb[48].mxu1 %vm3243_vm5, %v5528_v59 }
 0x212   : > { %v3195_v35 = vpack.c.bf16 %v3139_v8, %v3123_v14  ;;  %v3089_v62 = vadd.f32 %v5501_v56, %v2899_v20  ;;  %v2901_v34 = vpop.f32.mrb[29].mxu0  ;;  %3557 = vmatprep.mubr.bf16.mxu1 %v4708_v0 }
 0x213   : > { %v3196_v40 = vpack.c.bf16 %v3140_v15, %v3124_v43  ;;  %v3090_v25 = vadd.f32 %v5501_v56, %v2901_v34  ;;  %v2903_v46 = vpop.f32.mrb[30].mxu0  ;;  %v2952_v38 = vpop.f32.mrb[28].mxu1  ;;  %3568 = vmatprep.subr.bf16.mxu0 %v3194_v55 }
 0x214   : > { %v3105_v31 = vadd.f32 %v5513_v52, %v2903_v46  ;;  %v3091_v44 = vadd.f32 %v5501_v56, %v2952_v38  ;;  %v2905_v19 = vpop.f32.mrb[31].mxu0  ;;  %v2954_v16 = vpop.f32.mrb[29].mxu1  ;;  %3569 = vmatpush1.bf16.msra.mxu0 %v3193_v9  ;;  %v3153_v2 = vmax.f32 %v3089_v62, 0.0 }
 0x215   : > { %v3106_v21 = vadd.f32 %v5513_v52, %v2905_v19  ;;  %v3092_v17 = vadd.f32 %v5501_v56, %v2954_v16  ;;  %v2956_v24 = vpop.f32.mrb[30].mxu1  ;;  %3621 = vmatprep.subr.bf16.mxu1 %v3196_v40  ;;  %v3154_v63 = vmax.f32 %v3090_v25, 0.0  ;;  %v5643_v55 = vpop.permute.xlu1 %3230 }
 0x216   : > { %v3169_v27 = vmax.f32 %v3105_v31, 0.0  ;;  %v3107_v13 = vadd.f32 %v5513_v52, %v2956_v24  ;;  %v2958_v28 = vpop.f32.mrb[31].mxu1  ;;  %3622 = vmatpush1.bf16.msra.mxu1 %v3195_v35  ;;  %v3155_v26 = vmax.f32 %v3091_v44, 0.0 }
 0x217   : > { %v3170_v37 = vmax.f32 %v3106_v21, 0.0  ;;  %v3108_v48 = vadd.f32 %v5513_v52, %v2958_v28  ;;  %4366 = vmatmul.mubr.msk.bf16.gmra.mrb[52].mxu0 %vm3243_vm5, %v5547_v54  ;;  %v3156_v41 = vmax.f32 %v3092_v17, 0.0  ;;  %v5629_v52 = vpop.permute.xlu0 %3215 }
 0x218   : > { %v3209_v23 = vpack.c.bf16 %v3169_v27, %v3153_v2  ;;  %v3171_v45 = vmax.f32 %v3107_v13, 0.0  ;;  %3600 = vmatprep.mubr.bf16.mxu0 %v4708_v0 }
 0x219   : > { %v3210_v56 = vpack.c.bf16 %v3170_v37, %v3154_v63  ;;  %v3172_v47 = vmax.f32 %v3108_v48, 0.0  ;;  %4368 = vmatmul.mubr.msk.bf16.gmra.mrb[52].mxu1 %vm3243_vm5, %v5547_v54 }
 0x21a   : > { %v3211_v29 = vpack.c.bf16 %v3171_v45, %v3155_v26  ;;  %3653 = vmatprep.mubr.bf16.mxu1 %v4708_v0 }
 0x21b   : > { %v3212_v39 = vpack.c.bf16 %v3172_v47, %v3156_v41  ;;  %3570 = vmatprep.subr.bf16.mxu0 %v3210_v56  ;;  %v5641_v3 = vpop.permute.xlu0 %3225 }
 0x21c   : > { %3571 = vmatpush1.bf16.msra.mxu0 %v3209_v23 }
 0x21d   : > { %3623 = vmatprep.subr.bf16.mxu1 %v3212_v39 }
 0x21e   : > { %3624 = vmatpush1.bf16.msra.mxu1 %v3211_v29 }
 0x21f   : > { %4369 = vmatmul.mubr.msk.bf16.vlgmr.msra.gmra.mrb[56].mxu0 %vm3243_vm5, %v5528_v59 }
 0x220   : > { %3610 = vmatprep.mubr.bf16.mxu0 %v4708_v0 }
 0x221   : > { %4371 = vmatmul.mubr.msk.bf16.vlgmr.msra.gmra.mrb[56].mxu1 %vm3243_vm5, %v5528_v59 }
 0x222   : > { %3663 = vmatprep.mubr.bf16.mxu1 %v4708_v0 }
 0x227   : > { %4370 = vmatmul.mubr.msk.bf16.gmra.mrb[60].mxu0 %vm3243_vm5, %v5547_v54 }
 0x228   : > { %3812 = vmatprep.mubr.bf16.mxu0 %v4708_v0 }
 0x229   : > { %4372 = vmatmul.mubr.msk.bf16.gmra.mrb[60].mxu1 %vm3243_vm5, %v5547_v54 }
 0x22a   : > { %3853 = vmatprep.mubr.bf16.mxu1 %v4708_v0 }
 0x2c2   : > { %v3284_v49 = vpop.f32.mrb[32].mxu0 }
 0x2c3   : > { %v3285_v5 = vadd.f32 %v3284_v49, %v5629_v52  ;;  %v3286_v59 = vpop.f32.mrb[33].mxu0 }
 0x2c4   : > { %v3287_v7 = vadd.f32 %v3286_v59, %v5629_v52  ;;  %v3288_v51 = vpop.f32.mrb[34].mxu0  ;;  %v3337_v22 = vpop.f32.mrb[32].mxu1 }
 0x2c5   : > { %v3289_v36 = vadd.f32 %v3288_v51, %v5631_v30  ;;  %v3338_v53 = vadd.f32 %v3337_v22, %v5629_v52  ;;  %v3290_v18 = vpop.f32.mrb[35].mxu0  ;;  %v3339_v54 = vpop.f32.mrb[33].mxu1  ;;  %v3674_v1 = vmax.f32 %v3285_v5, 0.0 }
 0x2c6   : > { %v3291_v57 = vadd.f32 %v3290_v18, %v5631_v30  ;;  %v3340_v58 = vadd.f32 %v3339_v54, %v5629_v52  ;;  %v3341_v12 = vpop.f32.mrb[34].mxu1  ;;  %v3675_v50 = vmax.f32 %v3287_v7, 0.0 }
 0x2c7   : > { %v3690_v60 = vmax.f32 %v3289_v36, 0.0  ;;  %v3342_v42 = vadd.f32 %v3341_v12, %v5631_v30  ;;  %v3343_v61 = vpop.f32.mrb[35].mxu1  ;;  %v3676_v32 = vmax.f32 %v3338_v53, 0.0  ;;  %v5660_v53 = vld [vmem:[%s5815_s7] sm:$0x3] }
 0x2c8   : > { %v3691_v6 = vmax.f32 %v3291_v57, 0.0  ;;  %v3344_v4 = vadd.f32 %v3343_v61, %v5631_v30  ;;  %v3677_v9 = vmax.f32 %v3340_v58, 0.0 }
 0x2c9   : > { %v3740_v10 = vpack.c.bf16 %v3690_v60, %v3674_v1  ;;  %v3692_v11 = vmax.f32 %v3342_v42, 0.0 }
 0x2ca   : > { %v3741_v33 = vpack.c.bf16 %v3691_v6, %v3675_v50  ;;  %v3693_v14 = vmax.f32 %v3344_v4, 0.0  ;;  %v3294_v8 = vpop.f32.mrb[36].mxu0 }
 0x2cb   : > { %v3742_v43 = vpack.c.bf16 %v3692_v11, %v3676_v32  ;;  %v3295_v15 = vadd.f32 %v3294_v8, %v5641_v3  ;;  %v3296_v20 = vpop.f32.mrb[37].mxu0 }
 0x2cc   : > { %v3743_v35 = vpack.c.bf16 %v3693_v14, %v3677_v9  ;;  %v3297_v62 = vadd.f32 %v3296_v20, %v5641_v3  ;;  %v3298_v34 = vpop.f32.mrb[38].mxu0  ;;  %v3347_v40 = vpop.f32.mrb[36].mxu1  ;;  %3780 = vmatprep.subr.bf16.mxu0 %v3741_v33 }
 0x2cd   : > { %v3299_v25 = vadd.f32 %v3298_v34, %v5643_v55  ;;  %v3348_v46 = vadd.f32 %v3347_v40, %v5641_v3  ;;  %v3300_v38 = vpop.f32.mrb[39].mxu0  ;;  %v3349_v31 = vpop.f32.mrb[37].mxu1  ;;  %3781 = vmatpush1.bf16.msra.mxu0 %v3740_v10  ;;  %v3706_v21 = vmax.f32 %v3295_v15, 0.0 }
 0x2ce   : > { %v3301_v44 = vadd.f32 %v3300_v38, %v5643_v55  ;;  %v3350_v19 = vadd.f32 %v3349_v31, %v5641_v3  ;;  %v3351_v16 = vpop.f32.mrb[38].mxu1  ;;  %3821 = vmatprep.subr.bf16.mxu1 %v3743_v35  ;;  %v3707_v27 = vmax.f32 %v3297_v62, 0.0 }
 0x2cf   : > { %v3722_v17 = vmax.f32 %v3299_v25, 0.0  ;;  %v3352_v24 = vadd.f32 %v3351_v16, %v5643_v55  ;;  %v3353_v2 = vpop.f32.mrb[39].mxu1  ;;  %3822 = vmatpush1.bf16.msra.mxu1 %v3742_v43  ;;  %v3708_v37 = vmax.f32 %v3348_v46, 0.0 }
 0x2d0   : > { %v3723_v13 = vmax.f32 %v3301_v44, 0.0  ;;  %v3354_v28 = vadd.f32 %v3353_v2, %v5643_v55  ;;  %v3709_v26 = vmax.f32 %v3350_v19, 0.0 }
 0x2d1   : > { %v3756_v63 = vpack.c.bf16 %v3722_v17, %v3706_v21  ;;  %v3724_v48 = vmax.f32 %v3352_v24, 0.0 }
 0x2d2   : > { %v3757_v23 = vpack.c.bf16 %v3723_v13, %v3707_v27  ;;  %v3725_v45 = vmax.f32 %v3354_v28, 0.0  ;;  %v3390_v56 = vpop.f32.mrb[40].mxu0 }
 0x2d3   : > { %v3758_v41 = vpack.c.bf16 %v3724_v48, %v3708_v37  ;;  %v3391_v47 = vadd.f32 %v3390_v56, %v5629_v52  ;;  %v3392_v29 = vpop.f32.mrb[41].mxu0 }
 0x2d4   : > { %v3759_v39 = vpack.c.bf16 %v3725_v45, %v3709_v26  ;;  %v3393_v49 = vadd.f32 %v3392_v29, %v5629_v52  ;;  %v3394_v5 = vpop.f32.mrb[42].mxu0  ;;  %v3443_v59 = vpop.f32.mrb[40].mxu1  ;;  %3782 = vmatprep.subr.bf16.mxu0 %v3757_v23 }
 0x2d5   : > { %v3395_v7 = vadd.f32 %v3394_v5, %v5631_v30  ;;  %v3444_v51 = vadd.f32 %v3443_v59, %v5629_v52  ;;  %v3396_v22 = vpop.f32.mrb[43].mxu0  ;;  %v3445_v36 = vpop.f32.mrb[41].mxu1  ;;  %3783 = vmatpush1.bf16.msra.mxu0 %v3756_v63  ;;  %v3678_v58 = vmax.f32 %v3391_v47, 0.0 }
 0x2d6   : > { %v3397_v18 = vadd.f32 %v3396_v22, %v5631_v30  ;;  %v3446_v54 = vadd.f32 %v3445_v36, %v5629_v52  ;;  %v3447_v57 = vpop.f32.mrb[42].mxu1  ;;  %3823 = vmatprep.subr.bf16.mxu1 %v3759_v39  ;;  %v3679_v42 = vmax.f32 %v3393_v49, 0.0 }
 0x2d7   : > { %v3694_v12 = vmax.f32 %v3395_v7, 0.0  ;;  %v3448_v1 = vadd.f32 %v3447_v57, %v5631_v30  ;;  %v3449_v60 = vpop.f32.mrb[43].mxu1  ;;  %3824 = vmatpush1.bf16.msra.mxu1 %v3758_v41  ;;  %v3680_v4 = vmax.f32 %v3444_v51, 0.0 }
 0x2d8   : > { %v3695_v61 = vmax.f32 %v3397_v18, 0.0  ;;  %v3450_v50 = vadd.f32 %v3449_v60, %v5631_v30  ;;  %4373 = vmatmul.mubr.msk.bf16.vlgmr.msra.gmra.mrb[64].mxu0 %vm3243_vm5, %v5660_v53  ;;  %v3681_v11 = vmax.f32 %v3446_v54, 0.0 }
 0x2d9   : > { %v3744_v6 = vpack.c.bf16 %v3694_v12, %v3678_v58  ;;  %v3696_v10 = vmax.f32 %v3448_v1, 0.0  ;;  %3894 = vmatprep.mubr.bf16.mxu0 %v4708_v0 }
 0x2da   : > { %v3745_v32 = vpack.c.bf16 %v3695_v61, %v3679_v42  ;;  %v3697_v33 = vmax.f32 %v3450_v50, 0.0  ;;  %v3400_v9 = vpop.f32.mrb[44].mxu0  ;;  %4374 = vmatmul.mubr.msk.bf16.vlgmr.msra.gmra.mrb[64].mxu1 %vm3243_vm5, %v5660_v53 }
 0x2db   : > { %v3746_v14 = vpack.c.bf16 %v3696_v10, %v3680_v4  ;;  %v3401_v8 = vadd.f32 %v3400_v9, %v5641_v3  ;;  %v3402_v43 = vpop.f32.mrb[45].mxu0  ;;  %3935 = vmatprep.mubr.bf16.mxu1 %v4708_v0 }
 0x2dc   : > { %v3747_v15 = vpack.c.bf16 %v3697_v33, %v3681_v11  ;;  %v3403_v20 = vadd.f32 %v3402_v43, %v5641_v3  ;;  %v3404_v35 = vpop.f32.mrb[46].mxu0  ;;  %v3453_v62 = vpop.f32.mrb[44].mxu1  ;;  %3862 = vmatprep.subr.bf16.mxu0 %v3745_v32 }
 0x2dd   : > { %v3405_v34 = vadd.f32 %v3404_v35, %v5643_v55  ;;  %v3454_v40 = vadd.f32 %v3453_v62, %v5641_v3  ;;  %v3406_v25 = vpop.f32.mrb[47].mxu0  ;;  %v3455_v46 = vpop.f32.mrb[45].mxu1  ;;  %3863 = vmatpush1.bf16.msra.mxu0 %v3744_v6  ;;  %v3710_v19 = vmax.f32 %v3401_v8, 0.0 }
 0x2de   : > { %v3407_v38 = vadd.f32 %v3406_v25, %v5643_v55  ;;  %v3456_v31 = vadd.f32 %v3455_v46, %v5641_v3  ;;  %v3457_v44 = vpop.f32.mrb[46].mxu1  ;;  %3903 = vmatprep.subr.bf16.mxu1 %v3747_v15  ;;  %v3711_v24 = vmax.f32 %v3403_v20, 0.0 }
 0x2df   : > { %v3726_v16 = vmax.f32 %v3405_v34, 0.0  ;;  %v3458_v21 = vadd.f32 %v3457_v44, %v5643_v55  ;;  %v3459_v17 = vpop.f32.mrb[47].mxu1  ;;  %3904 = vmatpush1.bf16.msra.mxu1 %v3746_v14  ;;  %v3712_v28 = vmax.f32 %v3454_v40, 0.0 }
 0x2e0   : > { %v3727_v2 = vmax.f32 %v3407_v38, 0.0  ;;  %v3460_v27 = vadd.f32 %v3459_v17, %v5643_v55  ;;  %v3713_v48 = vmax.f32 %v3456_v31, 0.0 }
 0x2e1   : > { %v3760_v13 = vpack.c.bf16 %v3726_v16, %v3710_v19  ;;  %v3728_v63 = vmax.f32 %v3458_v21, 0.0 }
 0x2e2   : > { %v3761_v37 = vpack.c.bf16 %v3727_v2, %v3711_v24  ;;  %v3729_v23 = vmax.f32 %v3460_v27, 0.0  ;;  %v3496_v26 = vpop.f32.mrb[48].mxu0 }
 0x2e3   : > { %v3762_v45 = vpack.c.bf16 %v3728_v63, %v3712_v28  ;;  %v3497_v56 = vadd.f32 %v3496_v26, %v5629_v52  ;;  %v3498_v41 = vpop.f32.mrb[49].mxu0 }
 0x2e4   : > { %v3763_v47 = vpack.c.bf16 %v3729_v23, %v3713_v48  ;;  %v3499_v29 = vadd.f32 %v3498_v41, %v5629_v52  ;;  %v3500_v39 = vpop.f32.mrb[50].mxu0  ;;  %v3549_v49 = vpop.f32.mrb[48].mxu1  ;;  %3864 = vmatprep.subr.bf16.mxu0 %v3761_v37 }
 0x2e5   : > { %v3501_v5 = vadd.f32 %v3500_v39, %v5631_v30  ;;  %v3550_v59 = vadd.f32 %v3549_v49, %v5629_v52  ;;  %v3502_v7 = vpop.f32.mrb[51].mxu0  ;;  %v3551_v51 = vpop.f32.mrb[49].mxu1  ;;  %3865 = vmatpush1.bf16.msra.mxu0 %v3760_v13  ;;  %v3682_v54 = vmax.f32 %v3497_v56, 0.0 }
 0x2e6   : > { %v3503_v22 = vadd.f32 %v3502_v7, %v5631_v30  ;;  %v3552_v36 = vadd.f32 %v3551_v51, %v5629_v52  ;;  %v3553_v18 = vpop.f32.mrb[50].mxu1  ;;  %3905 = vmatprep.subr.bf16.mxu1 %v3763_v47  ;;  %v3683_v1 = vmax.f32 %v3499_v29, 0.0 }
 0x2e7   : > { %v3698_v57 = vmax.f32 %v3501_v5, 0.0  ;;  %v3554_v58 = vadd.f32 %v3553_v18, %v5631_v30  ;;  %v3555_v12 = vpop.f32.mrb[51].mxu1  ;;  %3906 = vmatpush1.bf16.msra.mxu1 %v3762_v45  ;;  %v3684_v50 = vmax.f32 %v3550_v59, 0.0 }
 0x2e8   : > { %v3699_v60 = vmax.f32 %v3503_v22, 0.0  ;;  %v3556_v42 = vadd.f32 %v3555_v12, %v5631_v30  ;;  %4375 = vmatmul.mubr.msk.bf16.vlgmr.msra.gmra.mrb[68].mxu0 %vm3243_vm5, %v5660_v53  ;;  %v3685_v10 = vmax.f32 %v3552_v36, 0.0 }
 0x2e9   : > { %v3748_v61 = vpack.c.bf16 %v3698_v57, %v3682_v54  ;;  %v3700_v6 = vmax.f32 %v3554_v58, 0.0  ;;  %3976 = vmatprep.mubr.bf16.mxu0 %v4708_v0 }
 0x2ea   : > { %v3749_v4 = vpack.c.bf16 %v3699_v60, %v3683_v1  ;;  %v3701_v32 = vmax.f32 %v3556_v42, 0.0  ;;  %v3506_v11 = vpop.f32.mrb[52].mxu0  ;;  %4376 = vmatmul.mubr.msk.bf16.vlgmr.msra.gmra.mrb[68].mxu1 %vm3243_vm5, %v5660_v53 }
 0x2eb   : > { %v3750_v33 = vpack.c.bf16 %v3700_v6, %v3684_v50  ;;  %v3507_v9 = vadd.f32 %v3506_v11, %v5641_v3  ;;  %v3508_v14 = vpop.f32.mrb[53].mxu0  ;;  %4017 = vmatprep.mubr.bf16.mxu1 %v4708_v0 }
 0x2ec   : > { %v3751_v8 = vpack.c.bf16 %v3701_v32, %v3685_v10  ;;  %v3509_v43 = vadd.f32 %v3508_v14, %v5641_v3  ;;  %v3510_v15 = vpop.f32.mrb[54].mxu0  ;;  %v3559_v20 = vpop.f32.mrb[52].mxu1  ;;  %3944 = vmatprep.subr.bf16.mxu0 %v3749_v4 }
 0x2ed   : > { %v3511_v35 = vadd.f32 %v3510_v15, %v5643_v55  ;;  %v3560_v62 = vadd.f32 %v3559_v20, %v5641_v3  ;;  %v3512_v34 = vpop.f32.mrb[55].mxu0  ;;  %v3561_v40 = vpop.f32.mrb[53].mxu1  ;;  %3945 = vmatpush1.bf16.msra.mxu0 %v3748_v61  ;;  %v3714_v31 = vmax.f32 %v3507_v9, 0.0 }
 0x2ee   : > { %v3513_v25 = vadd.f32 %v3512_v34, %v5643_v55  ;;  %v3562_v46 = vadd.f32 %v3561_v40, %v5641_v3  ;;  %v3563_v38 = vpop.f32.mrb[54].mxu1  ;;  %3985 = vmatprep.subr.bf16.mxu1 %v3751_v8  ;;  %v3715_v21 = vmax.f32 %v3509_v43, 0.0 }
 0x2ef   : > { %v3730_v44 = vmax.f32 %v3511_v35, 0.0  ;;  %v3564_v19 = vadd.f32 %v3563_v38, %v5643_v55  ;;  %v3565_v16 = vpop.f32.mrb[55].mxu1  ;;  %3986 = vmatpush1.bf16.msra.mxu1 %v3750_v33  ;;  %v3716_v27 = vmax.f32 %v3560_v62, 0.0 }
 0x2f0   : > { %v3731_v17 = vmax.f32 %v3513_v25, 0.0  ;;  %v3566_v24 = vadd.f32 %v3565_v16, %v5643_v55  ;;  %v3717_v63 = vmax.f32 %v3562_v46, 0.0 }
 0x2f1   : > { %v3764_v2 = vpack.c.bf16 %v3730_v44, %v3714_v31  ;;  %v3732_v13 = vmax.f32 %v3564_v19, 0.0 }
 0x2f2   : > { %v3765_v28 = vpack.c.bf16 %v3731_v17, %v3715_v21  ;;  %v3733_v37 = vmax.f32 %v3566_v24, 0.0  ;;  %v3602_v48 = vpop.f32.mrb[56].mxu0 }
 0x2f3   : > { %v3766_v23 = vpack.c.bf16 %v3732_v13, %v3716_v27  ;;  %v3603_v26 = vadd.f32 %v3602_v48, %v5629_v52  ;;  %v3604_v45 = vpop.f32.mrb[57].mxu0  ;;  %v5728_v13 = vpop.permute.xlu0 %3774 }
 0x2f4   : > { %v3767_v56 = vpack.c.bf16 %v3733_v37, %v3717_v63  ;;  %v3605_v41 = vadd.f32 %v3604_v45, %v5629_v52  ;;  %v3606_v47 = vpop.f32.mrb[58].mxu0  ;;  %v3655_v29 = vpop.f32.mrb[56].mxu1  ;;  %3946 = vmatprep.subr.bf16.mxu0 %v3765_v28 }
 0x2f5   : > { %v3607_v39 = vadd.f32 %v3606_v47, %v5631_v30  ;;  %v3656_v49 = vadd.f32 %v3655_v29, %v5629_v52  ;;  %v3608_v5 = vpop.f32.mrb[59].mxu0  ;;  %v3657_v59 = vpop.f32.mrb[57].mxu1  ;;  %3947 = vmatpush1.bf16.msra.mxu0 %v3764_v2  ;;  %v3686_v36 = vmax.f32 %v3603_v26, 0.0 }
 0x2f6   : > { %v3609_v7 = vadd.f32 %v3608_v5, %v5631_v30  ;;  %v3658_v51 = vadd.f32 %v3657_v59, %v5629_v52  ;;  %v3659_v22 = vpop.f32.mrb[58].mxu1  ;;  %3987 = vmatprep.subr.bf16.mxu1 %v3767_v56  ;;  %v3687_v58 = vmax.f32 %v3605_v41, 0.0 }
 0x2f7   : > { %v3702_v18 = vmax.f32 %v3607_v39, 0.0  ;;  %v3660_v54 = vadd.f32 %v3659_v22, %v5631_v30  ;;  %v3661_v57 = vpop.f32.mrb[59].mxu1  ;;  %3988 = vmatpush1.bf16.msra.mxu1 %v3766_v23  ;;  %v3688_v42 = vmax.f32 %v3656_v49, 0.0 }
 0x2f8   : > { %v3703_v12 = vmax.f32 %v3609_v7, 0.0  ;;  %v3662_v1 = vadd.f32 %v3661_v57, %v5631_v30  ;;  %4377 = vmatmul.mubr.msk.bf16.vlgmr.msra.gmra.mrb[72].mxu0 %vm3243_vm5, %v5660_v53  ;;  %v3689_v50 = vmax.f32 %v3658_v51, 0.0 }
 0x2f9   : > { %v3752_v60 = vpack.c.bf16 %v3702_v18, %v3686_v36  ;;  %v3704_v61 = vmax.f32 %v3660_v54, 0.0  ;;  %4058 = vmatprep.mubr.bf16.mxu0 %v4708_v0 }
 0x2fa   : > { %v3753_v52 = vpack.c.bf16 %v3703_v12, %v3687_v58  ;;  %v3705_v6 = vmax.f32 %v3662_v1, 0.0  ;;  %v3612_v4 = vpop.f32.mrb[60].mxu0  ;;  %4378 = vmatmul.mubr.msk.bf16.vlgmr.msra.gmra.mrb[72].mxu1 %vm3243_vm5, %v5660_v53 }
 0x2fb   : > { %v3754_v10 = vpack.c.bf16 %v3704_v61, %v3688_v42  ;;  %v3613_v32 = vadd.f32 %v3612_v4, %v5641_v3  ;;  %v3614_v11 = vpop.f32.mrb[61].mxu0  ;;  %4099 = vmatprep.mubr.bf16.mxu1 %v4708_v0 }
 0x2fc   : > { %v3755_v30 = vpack.c.bf16 %v3705_v6, %v3689_v50  ;;  %v3615_v33 = vadd.f32 %v3614_v11, %v5641_v3  ;;  %v3616_v9 = vpop.f32.mrb[62].mxu0  ;;  %v3665_v14 = vpop.f32.mrb[60].mxu1  ;;  %4026 = vmatprep.subr.bf16.mxu0 %v3753_v52 }
 0x2fd   : > { %v3617_v8 = vadd.f32 %v3616_v9, %v5643_v55  ;;  %v3666_v43 = vadd.f32 %v3665_v14, %v5641_v3  ;;  %v3618_v15 = vpop.f32.mrb[63].mxu0  ;;  %v3667_v20 = vpop.f32.mrb[61].mxu1  ;;  %4027 = vmatpush1.bf16.msra.mxu0 %v3752_v60  ;;  %v3718_v0 = vmax.f32 %v3613_v32, 0.0 }
 0x2fe   : > { %v3619_v35 = vadd.f32 %v3618_v15, %v5643_v55  ;;  %v3668_v62 = vadd.f32 %v3667_v20, %v5641_v3  ;;  %v3669_v34 = vpop.f32.mrb[62].mxu1  ;;  %4067 = vmatprep.subr.bf16.mxu1 %v3755_v30  ;;  %v3719_v38 = vmax.f32 %v3615_v33, 0.0 }
 0x2ff   : > { %v3734_v40 = vmax.f32 %v3617_v8, 0.0  ;;  %v3670_v25 = vadd.f32 %v3669_v34, %v5643_v55  ;;  %v3671_v46 = vpop.f32.mrb[63].mxu1  ;;  %4068 = vmatpush1.bf16.msra.mxu1 %v3754_v10  ;;  %v3720_v16 = vmax.f32 %v3666_v43, 0.0 }
 0x300   : > { %v3735_v31 = vmax.f32 %v3619_v35, 0.0  ;;  %v3672_v44 = vadd.f32 %v3671_v46, %v5643_v55  ;;  %v3721_v24 = vmax.f32 %v3668_v62, 0.0 }
 0x301   : > { %v3768_v19 = vpack.c.bf16 %v3734_v40, %v3718_v0  ;;  %v3736_v21 = vmax.f32 %v3670_v25, 0.0 }
 0x302   : > { %v3769_v17 = vpack.c.bf16 %v3735_v31, %v3719_v38  ;;  %v3737_v2 = vmax.f32 %v3672_v44, 0.0 }
 0x303   : > { %v3770_v27 = vpack.c.bf16 %v3736_v21, %v3720_v16 }
 0x304   : > { %v3771_v3 = vpack.c.bf16 %v3737_v2, %v3721_v24  ;;  %4028 = vmatprep.subr.bf16.mxu0 %v3769_v17 }
 0x305   : > { %4029 = vmatpush1.bf16.msra.mxu0 %v3768_v19 }
 0x306   : > { %4069 = vmatprep.subr.bf16.mxu1 %v3771_v3 }
 0x307   : > { %4070 = vmatpush1.bf16.msra.mxu1 %v3770_v27 }
 0x308   : > { %4379 = vmatmul.mubr.msk.bf16.vlgmr.msra.gmra.mrb[76].mxu0 %vm3243_vm5, %v5660_v53 }
 0x30a   : > { %4380 = vmatmul.mubr.msk.bf16.vlgmr.msra.gmra.mrb[76].mxu1 %vm3243_vm5, %v5660_v53 }
 0x3ab   : > { %v3814_v55 = vpop.f32.mrb[64].mxu0 }
 0x3ac   : > { %v3815_v28 = vadd.f32 %v3814_v55, %v5728_v13  ;;  %v3816_v63 = vpop.f32.mrb[65].mxu0 }
 0x3ad   : > { %v3817_v37 = vadd.f32 %v3816_v63, %v5728_v13  ;;  %v3855_v48 = vpop.f32.mrb[64].mxu1  ;;  %v3818_v23 = vpop.f32.mrb[66].mxu0 }
 0x3ae   : > { %4608 = vtanh.f32 %v3815_v28  ;;  %v3856_v26 = vadd.f32 %v3855_v48, %v5728_v13  ;;  %v3857_v45 = vpop.f32.mrb[65].mxu1  ;;  %v3819_v56 = vpop.f32.mrb[67].mxu0 }
 0x3af   : > { %4610 = vtanh.f32 %v3817_v37  ;;  %v3858_v53 = vadd.f32 %v3857_v45, %v5728_v13  ;;  %v3859_v41 = vpop.f32.mrb[66].mxu1 }
 0x3b0   : > { %4612 = vtanh.f32 %v3856_v26  ;;  %v3860_v47 = vpop.f32.mrb[67].mxu1 }
 0x3b1   : > { %4614 = vtanh.f32 %v3858_v53 }
 0x3b8   : > { %v4609_v29 = vpop.eup %4608 }
 0x3b9   : > { %v4611_v39 = vpop.eup %4610 }
 0x3ba   : > { %v4613_v49 = vpop.eup %4612  ;;  %v4140_v5 = vcombine.low %v4609_v29, %v4611_v39 }
 0x3bb   : > { %v4615_v59 = vpop.eup %4614  ;;  %v3896_v7 = vpop.f32.mrb[68].mxu0 }
 0x3bc   : > { %4156 = vst [vmem:[%s5737_s28] sm:$0x77] %v4140_v5  ;;  %v4141_v51 = vcombine.low %v4613_v49, %v4615_v59  ;;  %v3897_v22 = vadd.f32 %v3896_v7, %v5728_v13  ;;  %v3898_v36 = vpop.f32.mrb[69].mxu0 }
 0x3bd   : > { %v3899_v18 = vadd.f32 %v3898_v36, %v5728_v13  ;;  %v3937_v54 = vpop.f32.mrb[68].mxu1  ;;  %v3900_v57 = vpop.f32.mrb[70].mxu0 }
 0x3be   : > { %4157 = vst [vmem:[%s5737_s28 + $0x8] sm:$0x77] %v4141_v51  ;;  %4616 = vtanh.f32 %v3897_v22  ;;  %v3938_v58 = vadd.f32 %v3937_v54, %v5728_v13  ;;  %v3939_v12 = vpop.f32.mrb[69].mxu1  ;;  %v3901_v1 = vpop.f32.mrb[71].mxu0 }
 0x3bf   : > { %4618 = vtanh.f32 %v3899_v18  ;;  %v3940_v60 = vadd.f32 %v3939_v12, %v5728_v13  ;;  %v3941_v42 = vpop.f32.mrb[70].mxu1 }
 0x3c0   : > { %4620 = vtanh.f32 %v3938_v58  ;;  %v3942_v61 = vpop.f32.mrb[71].mxu1 }
 0x3c1   : > { %4622 = vtanh.f32 %v3940_v60 }
 0x3c8   : > { %v4617_v52 = vpop.eup %4616 }
 0x3c9   : > { %v4619_v50 = vpop.eup %4618 }
 0x3ca   : > { %v4621_v6 = vpop.eup %4620  ;;  %v4142_v4 = vcombine.low %v4617_v52, %v4619_v50 }
 0x3cb   : > { %v4623_v10 = vpop.eup %4622  ;;  %v3978_v32 = vpop.f32.mrb[72].mxu0 }
 0x3cc   : > { %4158 = vst [vmem:[%s5737_s28 + $0x10] sm:$0x77] %v4142_v4  ;;  %v4143_v11 = vcombine.low %v4621_v6, %v4623_v10  ;;  %v3979_v30 = vadd.f32 %v3978_v32, %v5728_v13  ;;  %v3980_v33 = vpop.f32.mrb[73].mxu0 }
 0x3cd   : > { %v3981_v9 = vadd.f32 %v3980_v33, %v5728_v13  ;;  %v4019_v14 = vpop.f32.mrb[72].mxu1  ;;  %v3982_v8 = vpop.f32.mrb[74].mxu0 }
 0x3ce   : > { %4159 = vst [vmem:[%s5737_s28 + $0x18] sm:$0x77] %v4143_v11  ;;  %4624 = vtanh.f32 %v3979_v30  ;;  %v4020_v43 = vadd.f32 %v4019_v14, %v5728_v13  ;;  %v4021_v15 = vpop.f32.mrb[73].mxu1  ;;  %v3983_v20 = vpop.f32.mrb[75].mxu0 }
 0x3cf   : > { %4626 = vtanh.f32 %v3981_v9  ;;  %v4022_v35 = vadd.f32 %v4021_v15, %v5728_v13  ;;  %v4023_v62 = vpop.f32.mrb[74].mxu1 }
 0x3d0   : > { %4628 = vtanh.f32 %v4020_v43  ;;  %v4024_v34 = vpop.f32.mrb[75].mxu1 }
 0x3d1   : > { %4630 = vtanh.f32 %v4022_v35 }
 0x3d8   : > { %v4625_v0 = vpop.eup %4624 }
 0x3d9   : > { %v4627_v40 = vpop.eup %4626 }
 0x3da   : > { %v4629_v25 = vpop.eup %4628  ;;  %v4144_v46 = vcombine.low %v4625_v0, %v4627_v40 }
 0x3db   : > { %v4631_v38 = vpop.eup %4630  ;;  %v4060_v31 = vpop.f32.mrb[76].mxu0 }
 0x3dc   : > { %4160 = vst [vmem:[%s5737_s28 + $0x20] sm:$0x77] %v4144_v46  ;;  %v4145_v44 = vcombine.low %v4629_v25, %v4631_v38  ;;  %v4061_v19 = vadd.f32 %v4060_v31, %v5728_v13  ;;  %v4062_v16 = vpop.f32.mrb[77].mxu0 }
 0x3dd   : > { %v4063_v21 = vadd.f32 %v4062_v16, %v5728_v13  ;;  %v4101_v17 = vpop.f32.mrb[76].mxu1  ;;  %v4064_v24 = vpop.f32.mrb[78].mxu0 }
 0x3de   : > { %4161 = vst [vmem:[%s5737_s28 + $0x28] sm:$0x77] %v4145_v44  ;;  %4632 = vtanh.f32 %v4061_v19  ;;  %v4102_v2 = vadd.f32 %v4101_v17, %v5728_v13  ;;  %v4103_v27 = vpop.f32.mrb[77].mxu1  ;;  %v4065_v3 = vpop.f32.mrb[79].mxu0 }
 0x3df   : > { %4634 = vtanh.f32 %v4063_v21  ;;  %v4104_v55 = vadd.f32 %v4103_v27, %v5728_v13  ;;  %v4105_v28 = vpop.f32.mrb[78].mxu1 }
 0x3e0   : > { %4636 = vtanh.f32 %v4102_v2  ;;  %v4106_v63 = vpop.f32.mrb[79].mxu1 }
 0x3e1   : > { %4638 = vtanh.f32 %v4104_v55 }
 0x3e8   : > { %v4633_v37 = vpop.eup %4632 }
 0x3e9   : > { %v4635_v48 = vpop.eup %4634 }
 0x3ea   : > { %v4637_v23 = vpop.eup %4636  ;;  %v4146_v26 = vcombine.low %v4633_v37, %v4635_v48 }
 0x3eb   : > { %v4639_v45 = vpop.eup %4638 }
 0x3ec   : > { %4162 = vst [vmem:[%s5737_s28 + $0x30] sm:$0x77] %v4146_v26  ;;  %v4147_v56 = vcombine.low %v4637_v23, %v4639_v45 }
 0x3ee   : > { %4163 = vst [vmem:[%s5737_s28 + $0x38] sm:$0x77] %v4147_v56 }
 0x3ef   : > { %4657 = shalt.err (!%p4654_p3)
}
 0x3f0   : > { %s4658_s26 = scalar_lea.hbm %s5763_s21, 1024  ;;  %s4662_s29 = scalar_lea.hbm %s5817_s9, 2048 }
 0x3f1   : > { %p4659_p4 = scmp.ne.s32.totalorder %s5763_s21, %s4658_s26  ;;  %p4663_p9 = scmp.lt.u32.totalorder %s5763_s21, %s5817_s9 }
 0x3f2   : > { %p4664_p10 = scmp.lt.u32.totalorder %s4662_s29, %s4658_s26  ;;  %p4666_p12 = scmp.lt.u32.totalorder %s4658_s26, %s5763_s21 }
 0x3f3   : > { %p4660_p7 = pnand %p4659_p4, %p4805_p5 }
 0x3f4   : > { %p4665_p11 = por %p4664_p10, %p4663_p9 }
 0x3f5   : > { %p4661_p8 = pneg %p4660_p7 }
 0x3f6   : > { %p4667_p13 = por %p4666_p12, %p4665_p11 }
 0x3f8   : > { %p4668_p0 = pnand %p4667_p13, %p4661_p8 }
 0x3fa   : > { %4671 = shalt.err (!%p4668_p0)
}
 0x3fb   : > { %4531 = dma.vmem_to_hbm [thread:$0]  (%p4805_p5), %s5765_s14, 1024, %s5763_s21, %s4165_s22  }
 0x3fc PF: > { %p4537_p1 = scmp.ge.s32.totalorder %s4706_s12, 2  ;;  %s4191_s13 = sand.u32 1, %s4694_s30  }
 0x3fd   : > { %s4192_s23 = scalar_lea.sflag [#allocation3], %s4191_s13 }
 0x3fe   : > { %p4534_p2 = pnand %p4537_p1, %p4809_p6 }
 0x400   : > { %4689 = dma.done.wait (!%p4534_p2), %s4192_s23, 1024  }
 0x401   : > { %4691 = vsyncadd (!%p4534_p2), %s4192_s23, 4294966272  ;;  %p19_p3 = scmp.ge.s32.totalorder %s4792_s15, 4   ;;  %s5824_s30 = smov %s4698_s10 }
 0x402   : > { %s5825_s10 = smov %s4702_s11  ;;  %s5826_s11 = smov %s4803_s18 }
 0x403   : > { %s5827_s12 = smov %s4792_s15  ;;  %21 = sbr.rel (!%p19_p3) target bundleno = 3 (0x3), region = 91 }
 0x40a   :  { %4197 = vsyncpa [#allocation3], 1 }
 0x40b   :  { %4199 = vsyncpa [#allocation3 + $0x1], 1 }

</bundles_post_ra>
